<compile_context>
chip_gen: v6e
topology: v6e:2x2x1
jax: 0.10.0
libtpu: 0.0.40
codegen_flags: <defaults>
</compile_context>

<pallas_src>
import functools

import numpy as np
import jax
import jax.numpy as jnp
from jax.experimental import pallas as pl
from jax.experimental.pallas import tpu as pltpu


# ------------------------------------------------------------------ kernels --

def _mlp2_kernel(z_ref, w1_ref, b1_ref, s1_ref, t1_ref,
                 w2_ref, b2_ref, s2_ref, t2_ref, o_ref):
    """Fused dec_lin1 + dec_lin2: (matmul+bias+LeakyReLU+BN affine) x 2."""
    h = jnp.dot(z_ref[...], w1_ref[...], preferred_element_type=jnp.float32)
    h = h + b1_ref[...]
    h = jnp.where(h >= 0, h, 0.01 * h)                 # nn.LeakyReLU default slope
    h = h * s1_ref[...] + t1_ref[...]                  # eval-mode BatchNorm1d
    y = jnp.dot(h, w2_ref[...], preferred_element_type=jnp.float32)
    y = y + b2_ref[...]
    y = jnp.where(y >= 0, y, 0.01 * y)
    y = y * s2_ref[...] + t2_ref[...]
    o_ref[...] = y.astype(o_ref.dtype)


def _phase_conv_kernel(c_ref, w_ref, b_ref, s_ref, t_ref, o_ref):
    """Phase-stacked conv-transpose matmul + bias + LeakyReLU + BN2d affine."""
    y = jnp.dot(c_ref[...], w_ref[...], preferred_element_type=jnp.float32)
    y = y + b_ref[...]
    y = jnp.where(y >= 0, y, 0.01 * y)
    y = y * s_ref[...] + t_ref[...]
    o_ref[...] = y.astype(o_ref.dtype)


def _phase_conv_out_kernel(wT_ref, cT_ref, b_ref, o_ref):
    """Transposed phase conv-transpose matmul + scalar bias + sigmoid.
    Output is (S*S*Cout, B*Q*Q): the big axis sits on lanes (dense stores)."""
    y = jnp.dot(wT_ref[...], cT_ref[...], preferred_element_type=jnp.float32)
    y = y + b_ref[0]                                   # scalar bias from SMEM
    o_ref[...] = jax.nn.sigmoid(y).astype(o_ref.dtype)


# --------------------------------------------------------- pallas wrappers ---

def _vmem():
    return pl.BlockSpec(memory_space=pltpu.MemorySpace.VMEM)


def _smem():
    return pl.BlockSpec(memory_space=pltpu.MemorySpace.SMEM)


def mlp2(z, w1, b1, s1, t1, w2, b2, s2, t2):
    B = z.shape[0]
    N = w2.shape[1]
    return pl.pallas_call(
        _mlp2_kernel,
        out_shape=jax.ShapeDtypeStruct((B, N), jnp.float32),
        in_specs=[_vmem() for _ in range(9)],
        out_specs=_vmem(),
    )(z, w1, b1, s1, t1, w2, b2, s2, t2)


def phase_conv(cols, w, b, s, t):
    M = cols.shape[0]
    N = w.shape[1]
    return pl.pallas_call(
        _phase_conv_kernel,
        out_shape=jax.ShapeDtypeStruct((M, N), jnp.float32),
        in_specs=[_vmem() for _ in range(5)],
        out_specs=_vmem(),
    )(cols, w, b, s, t)


def phase_conv_out(wT, colsT, b):
    N = wT.shape[0]
    M = colsT.shape[1]
    return pl.pallas_call(
        _phase_conv_out_kernel,
        out_shape=jax.ShapeDtypeStruct((N, M), jnp.float32),
        in_specs=[_vmem(), _vmem(), _smem()],
        out_specs=_vmem(),
    )(wT, colsT, b)


# -------------------------------------------------------------- JAX "glue" ---

def _phase_im2col(x_nhwc, T):
    """patch[b, qh, qw, (th, tw, c)] = x[b, qh - th, qw - tw, c]  (zero outside)."""
    B, H, W, C = x_nhwc.shape
    QH, QW = H + T - 1, W + T - 1
    p = T - 1
    xp = jnp.pad(x_nhwc, ((0, 0), (p, p), (p, p), (0, 0)))
    parts = [xp[:, p - th:p - th + QH, p - tw:p - tw + QW, :]
             for th in range(T) for tw in range(T)]
    cols = jnp.concatenate(parts, axis=-1)             # (B, QH, QW, T*T*C)
    return cols.reshape(B * QH * QW, T * T * C), (QH, QW)


def _phase_weight(w, K, S, T):
    """PyTorch ConvTranspose2d weight (Cin, Cout, K, K) -> phase matrix
    (T*T*Cin, S*S*Cout): W[(th,tw,ci),(rh,rw,co)] = w[ci,co,th*S+rh,tw*S+rw] (0 if >= K)."""
    Cin, Cout = w.shape[0], w.shape[1]
    pad = T * S - K
    wp = jnp.pad(w, ((0, 0), (0, 0), (0, pad), (0, pad)))
    wp = wp.reshape(Cin, Cout, T, S, T, S).transpose(2, 4, 0, 3, 5, 1)
    return wp.reshape(T * T * Cin, S * S * Cout)


def _bn_affine(gamma, beta, mean, var, eps=1e-5):
    scale = gamma / jnp.sqrt(var + eps)
    shift = beta - mean * scale
    return scale[None, :], shift[None, :]


def prepare_params(p, *, dim, f1, f2):
    """Fold/permute PyTorch-layout parameters into kernel-ready tensors (done once)."""
    s1, t1 = _bn_affine(p['bn1_g'], p['bn1_b'], p['bn1_m'], p['bn1_v'])
    # dec_lin2 features permuted from (c, i, j) [PyTorch unflatten order] to (i, j, c)
    # so its output is directly NHWC-flat (no transpose of activations needed).
    perm = np.arange(f2 * dim * dim).reshape(f2, dim, dim).transpose(1, 2, 0).reshape(-1)
    w2 = p['w2'][:, perm]
    b2 = p['b2'][perm]
    s2, t2 = _bn_affine(p['bn2_g'][perm], p['bn2_b'][perm],
                        p['bn2_m'][perm], p['bn2_v'][perm])
    # decnn1: ConvTranspose2d(f2, f1, 7, stride=4) -> T=2 taps/phase, 16 phases.
    W1 = _phase_weight(p['cw1'], K=7, S=4, T=2)        # (4*f2, 16*f1)
    cb1 = jnp.tile(p['cb1'], 16)[None, :]
    s3, t3 = _bn_affine(p['bn3_g'], p['bn3_b'], p['bn3_m'], p['bn3_v'])
    s3, t3 = jnp.tile(s3, (1, 16)), jnp.tile(t3, (1, 16))
    # decnn2: ConvTranspose2d(f1, 1, 4, stride=2) -> T=2 taps/phase, 4 phases, transposed.
    W2T = _phase_weight(p['cw2'], K=4, S=2, T=2).T     # (4, 4*f1)
    return dict(w1=p['w1'], b1=p['b1'][None, :], s1=s1, t1=t1,
                w2=w2, b2=b2[None, :], s2=s2, t2=t2,
                W1=W1, cb1=cb1, s3=s3, t3=t3,
                W2T=W2T, cb2=p['cb2'])


def decoder_forward(z, q, *, dim, f1, f2):
    B = z.shape[0]
    # dec_lin1 + dec_lin2 fused (single pallas_call); output features already NHWC-flat.
    h = mlp2(z, q['w1'], q['b1'], q['s1'], q['t1'],
             q['w2'], q['b2'], q['s2'], q['t2'])                   # (B, dim*dim*f2)
    x = h.reshape(B, dim, dim, f2)

    # decnn1: ConvTranspose2d(f2, f1, 7, stride=4, padding=1) + LeakyReLU + BN2d
    cols1, (Q1, _) = _phase_im2col(x, T=2)                         # (B*Q1*Q1, 4*f2)
    y = phase_conv(cols1, q['W1'], q['cb1'], q['s3'], q['t3'])     # (B*Q1*Q1, 16*f1)
    # depth-to-space over the 4x4 phases, then crop padding=1 from each side
    y = y.reshape(B, Q1, Q1, 4, 4, f1).transpose(0, 1, 3, 2, 4, 5)
    y = y.reshape(B, Q1 * 4, Q1 * 4, f1)
    OH1 = (dim - 1) * 4 - 2 + 7
    y = y[:, 1:1 + OH1, 1:1 + OH1, :]                              # (B, 17, 17, f1)

    # decnn2: ConvTranspose2d(f1, 1, 4, stride=2) + sigmoid (transposed, lane-dense out)
    cols2, (Q2, _) = _phase_im2col(y, T=2)                         # (B*Q2*Q2, 4*f1)
    oT = phase_conv_out(q['W2T'], cols2.T, q['cb2'])               # (4, B*Q2*Q2)
    out = oT.reshape(2, 2, B, Q2, Q2).transpose(2, 3, 0, 4, 1).reshape(B, Q2 * 2, Q2 * 2)
    return out[:, None, :, :]                                      # (B, 1, 36, 36) NCHW


# ----------------------------------------------------------------- params ----

def init_params(key, latent, node1, f1, f2, dim):
    n2 = f2 * dim * dim
    ks = jax.random.split(key, 20)
    nrm = lambda k, s, sc=0.05: sc * jax.random.normal(k, s, jnp.float32)
    unif = lambda k, s: jax.random.uniform(k, s, jnp.float32, 0.5, 1.5)
    return dict(
        w1=nrm(ks[0], (latent, node1)), b1=nrm(ks[1], (node1,)),
        bn1_g=1.0 + nrm(ks[2], (node1,)), bn1_b=nrm(ks[3], (node1,)),
        bn1_m=nrm(ks[4], (node1,)), bn1_v=unif(ks[5], (node1,)),
        w2=nrm(ks[6], (node1, n2)), b2=nrm(ks[7], (n2,)),
        bn2_g=1.0 + nrm(ks[8], (n2,)), bn2_b=nrm(ks[9], (n2,)),
        bn2_m=nrm(ks[10], (n2,)), bn2_v=unif(ks[11], (n2,)),
        cw1=nrm(ks[12], (f2, f1, 7, 7)), cb1=nrm(ks[13], (f1,)),
        bn3_g=1.0 + nrm(ks[14], (f1,)), bn3_b=nrm(ks[15], (f1,)),
        bn3_m=nrm(ks[16], (f1,)), bn3_v=unif(ks[17], (f1,)),
        cw2=nrm(ks[18], (f1, 1, 4, 4)), cb2=nrm(ks[19], (1,)),
    )


# -------------------------------------------------------- numpy reference ----

def _ref_convT(x, w, b, S, P):           # x: (B,Cin,H,W), w: (Cin,Cout,K,K)
    B, Cin, H, W = x.shape
    _, Cout, K, _ = w.shape
    full = np.zeros((B, Cout, (H - 1) * S + K, (W - 1) * S + K), np.float64)
    for ih in range(H):
        for iw in range(W):
            full[:, :, ih * S:ih * S + K, iw * S:iw * S + K] += np.einsum(
                'bi,iokl->bokl', x[:, :, ih, iw], w)
    Ht, Wt = full.shape[2], full.shape[3]
    return full[:, :, P:Ht - P, P:Wt - P] + b[None, :, None, None]


def ref_decoder(z, p, dim, f1, f2):
    pn = {k: np.asarray(v, np.float64) for k, v in p.items()}
    lrelu = lambda x: np.where(x >= 0, x, 0.01 * x)
    bn = lambda x, g, b, m, v: (x - m) / np.sqrt(v + 1e-5) * g + b
    h = lrelu(np.asarray(z, np.float64) @ pn['w1'] + pn['b1'])
    h = bn(h, pn['bn1_g'], pn['bn1_b'], pn['bn1_m'], pn['bn1_v'])
    h = lrelu(h @ pn['w2'] + pn['b2'])
    h = bn(h, pn['bn2_g'], pn['bn2_b'], pn['bn2_m'], pn['bn2_v'])
    B = z.shape[0]
    x = h.reshape(B, f2, dim, dim)
    x = _ref_convT(x, pn['cw1'], pn['cb1'], 4, 1)
    x = lrelu(x)
    x = bn(x, pn['bn3_g'][None, :, None, None], pn['bn3_b'][None, :, None, None],
           pn['bn3_m'][None, :, None, None], pn['bn3_v'][None, :, None, None])
    x = _ref_convT(x, pn['cw2'], pn['cb2'], 2, 0)
    return 1.0 / (1.0 + np.exp(-x))


# ------------------------------------------------------------------- main ----

if __name__ == "__main__":
    # Small shapes consistent with the module: par fixed (node1=800, filters=32),
    # constructor args latent=16, dim=4, batch=2.
    latent, node1, f1, f2, dim, B = 16, 800, 32, 32, 4, 2

    key = jax.random.PRNGKey(0)
    kz, kp = jax.random.split(key)
    params = init_params(kp, latent, node1, f1, f2, dim)
    z = jax.random.normal(kz, (B, latent), jnp.float32)

    prep = prepare_params(params, dim=dim, f1=f1, f2=f2)   # one-time weight prep
    fwd = jax.jit(functools.partial(decoder_forward, dim=dim, f1=f1, f2=f2))
    out = jax.block_until_ready(fwd(z, prep))

    # Expected output spatial: ((dim-1)*4 - 2 + 7 - 1)*2 + 4  -> (B, 1, 36, 36)
    assert out.shape == (B, 1, 36, 36), out.shape

    ref = ref_decoder(np.asarray(z), params, dim, f1, f2)
    np.testing.assert_allclose(np.asarray(out), ref, atol=5e-3, rtol=5e-2)
    print("KERNEL_OK")
</pallas_src>

<mosaic_0001>
module attributes {stable_mosaic.version = 11 : i64} {
  func.func @_mlp2_kernel(%arg0: memref<2x16xf32, #tpu.memory_space<vmem>>, %arg1: memref<16x800xf32, #tpu.memory_space<vmem>>, %arg2: memref<1x800xf32, #tpu.memory_space<vmem>>, %arg3: memref<1x800xf32, #tpu.memory_space<vmem>>, %arg4: memref<1x800xf32, #tpu.memory_space<vmem>>, %arg5: memref<800x512xf32, #tpu.memory_space<vmem>>, %arg6: memref<1x512xf32, #tpu.memory_space<vmem>>, %arg7: memref<1x512xf32, #tpu.memory_space<vmem>>, %arg8: memref<1x512xf32, #tpu.memory_space<vmem>>, %arg9: memref<2x512xf32, #tpu.memory_space<vmem>>) attributes {dimension_semantics = [], scalar_prefetch = 0 : i64, scratch_operands = 0 : i64, tpu.core_type = #tpu.core_type<tc>} {
    %c0 = arith.constant 0 : index
    %c0_0 = arith.constant 0 : index
    %0 = vector.load %arg0[%c0, %c0_0] : memref<2x16xf32, #tpu.memory_space<vmem>>, vector<2x16xf32>
    %c0_1 = arith.constant 0 : index
    %c0_2 = arith.constant 0 : index
    %1 = vector.load %arg1[%c0_1, %c0_2] : memref<16x800xf32, #tpu.memory_space<vmem>>, vector<16x800xf32>
    %cst = arith.constant dense<0.000000e+00> : vector<2x800xf32>
    %2 = tpu.matmul %0, %1, %cst {dimension_numbers = #tpu.dot_dimension_numbers<[1], [0], [0], [1], [0, 0, 1, 1], [], []>} : vector<2x16xf32>, vector<16x800xf32>, vector<2x800xf32> -> vector<2x800xf32>
    %c0_3 = arith.constant 0 : index
    %c0_4 = arith.constant 0 : index
    %3 = vector.load %arg2[%c0_3, %c0_4] : memref<1x800xf32, #tpu.memory_space<vmem>>, vector<1x800xf32>
    %4 = vector.broadcast %3 : vector<1x800xf32> to vector<2x800xf32>
    %5 = arith.addf %2, %4 : vector<2x800xf32>
    %cst_5 = arith.constant 0.000000e+00 : f32
    %6 = vector.broadcast %cst_5 : f32 to vector<2x800xf32>
    %7 = arith.cmpf oge, %5, %6 : vector<2x800xf32>
    %cst_6 = arith.constant 0.00999999977 : f32
    %8 = vector.broadcast %cst_6 : f32 to vector<2x800xf32>
    %9 = arith.mulf %8, %5 : vector<2x800xf32>
    %10 = arith.select %7, %5, %9 : vector<2x800xi1>, vector<2x800xf32>
    %c0_7 = arith.constant 0 : index
    %c0_8 = arith.constant 0 : index
    %11 = vector.load %arg3[%c0_7, %c0_8] : memref<1x800xf32, #tpu.memory_space<vmem>>, vector<1x800xf32>
    %12 = vector.broadcast %11 : vector<1x800xf32> to vector<2x800xf32>
    %13 = arith.mulf %10, %12 : vector<2x800xf32>
    %c0_9 = arith.constant 0 : index
    %c0_10 = arith.constant 0 : index
    %14 = vector.load %arg4[%c0_9, %c0_10] : memref<1x800xf32, #tpu.memory_space<vmem>>, vector<1x800xf32>
    %15 = vector.broadcast %14 : vector<1x800xf32> to vector<2x800xf32>
    %16 = arith.addf %13, %15 : vector<2x800xf32>
    %c0_11 = arith.constant 0 : index
    %c0_12 = arith.constant 0 : index
    %17 = vector.load %arg5[%c0_11, %c0_12] : memref<800x512xf32, #tpu.memory_space<vmem>>, vector<800x512xf32>
    %cst_13 = arith.constant dense<0.000000e+00> : vector<2x512xf32>
    %18 = tpu.matmul %16, %17, %cst_13 {dimension_numbers = #tpu.dot_dimension_numbers<[1], [0], [0], [1], [0, 0, 1, 1], [], []>} : vector<2x800xf32>, vector<800x512xf32>, vector<2x512xf32> -> vector<2x512xf32>
    %c0_14 = arith.constant 0 : index
    %c0_15 = arith.constant 0 : index
    %19 = vector.load %arg6[%c0_14, %c0_15] : memref<1x512xf32, #tpu.memory_space<vmem>>, vector<1x512xf32>
    %20 = vector.broadcast %19 : vector<1x512xf32> to vector<2x512xf32>
    %21 = arith.addf %18, %20 : vector<2x512xf32>
    %cst_16 = arith.constant 0.000000e+00 : f32
    %22 = vector.broadcast %cst_16 : f32 to vector<2x512xf32>
    %23 = arith.cmpf oge, %21, %22 : vector<2x512xf32>
    %cst_17 = arith.constant 0.00999999977 : f32
    %24 = vector.broadcast %cst_17 : f32 to vector<2x512xf32>
    %25 = arith.mulf %24, %21 : vector<2x512xf32>
    %26 = arith.select %23, %21, %25 : vector<2x512xi1>, vector<2x512xf32>
    %c0_18 = arith.constant 0 : index
    %c0_19 = arith.constant 0 : index
    %27 = vector.load %arg7[%c0_18, %c0_19] : memref<1x512xf32, #tpu.memory_space<vmem>>, vector<1x512xf32>
    %28 = vector.broadcast %27 : vector<1x512xf32> to vector<2x512xf32>
    %29 = arith.mulf %26, %28 : vector<2x512xf32>
    %c0_20 = arith.constant 0 : index
    %c0_21 = arith.constant 0 : index
    %30 = vector.load %arg8[%c0_20, %c0_21] : memref<1x512xf32, #tpu.memory_space<vmem>>, vector<1x512xf32>
    %31 = vector.broadcast %30 : vector<1x512xf32> to vector<2x512xf32>
    %32 = arith.addf %29, %31 : vector<2x512xf32>
    %c0_22 = arith.constant 0 : index
    %c0_23 = arith.constant 0 : index
    %33 = vector.load %arg9[%c0_22, %c0_23] : memref<2x512xf32, #tpu.memory_space<vmem>>, vector<2x512xf32>
    tpu.vector_store %arg9[%c0_22, %c0_23], %32 {strides = array<i32>} : memref<2x512xf32, #tpu.memory_space<vmem>>, vector<2x512xf32>,
    return
  }
}

module attributes {stable_mosaic.version = 11 : i64} {
  func.func @_phase_conv_kernel(%arg0: memref<50x128xf32, #tpu.memory_space<vmem>>, %arg1: memref<128x512xf32, #tpu.memory_space<vmem>>, %arg2: memref<1x512xf32, #tpu.memory_space<vmem>>, %arg3: memref<1x512xf32, #tpu.memory_space<vmem>>, %arg4: memref<1x512xf32, #tpu.memory_space<vmem>>, %arg5: memref<50x512xf32, #tpu.memory_space<vmem>>) attributes {dimension_semantics = [], scalar_prefetch = 0 : i64, scratch_operands = 0 : i64, tpu.core_type = #tpu.core_type<tc>} {
    %c0 = arith.constant 0 : index
    %c0_0 = arith.constant 0 : index
    %0 = vector.load %arg0[%c0, %c0_0] : memref<50x128xf32, #tpu.memory_space<vmem>>, vector<50x128xf32>
    %c0_1 = arith.constant 0 : index
    %c0_2 = arith.constant 0 : index
    %1 = vector.load %arg1[%c0_1, %c0_2] : memref<128x512xf32, #tpu.memory_space<vmem>>, vector<128x512xf32>
    %cst = arith.constant dense<0.000000e+00> : vector<50x512xf32>
    %2 = tpu.matmul %0, %1, %cst {dimension_numbers = #tpu.dot_dimension_numbers<[1], [0], [0], [1], [0, 0, 1, 1], [], []>} : vector<50x128xf32>, vector<128x512xf32>, vector<50x512xf32> -> vector<50x512xf32>
    %c0_3 = arith.constant 0 : index
    %c0_4 = arith.constant 0 : index
    %3 = vector.load %arg2[%c0_3, %c0_4] : memref<1x512xf32, #tpu.memory_space<vmem>>, vector<1x512xf32>
    %4 = vector.broadcast %3 : vector<1x512xf32> to vector<50x512xf32>
    %5 = arith.addf %2, %4 : vector<50x512xf32>
    %cst_5 = arith.constant 0.000000e+00 : f32
    %6 = vector.broadcast %cst_5 : f32 to vector<50x512xf32>
    %7 = arith.cmpf oge, %5, %6 : vector<50x512xf32>
    %cst_6 = arith.constant 0.00999999977 : f32
    %8 = vector.broadcast %cst_6 : f32 to vector<50x512xf32>
    %9 = arith.mulf %8, %5 : vector<50x512xf32>
    %10 = arith.select %7, %5, %9 : vector<50x512xi1>, vector<50x512xf32>
    %c0_7 = arith.constant 0 : index
    %c0_8 = arith.constant 0 : index
    %11 = vector.load %arg3[%c0_7, %c0_8] : memref<1x512xf32, #tpu.memory_space<vmem>>, vector<1x512xf32>
    %12 = vector.broadcast %11 : vector<1x512xf32> to vector<50x512xf32>
    %13 = arith.mulf %10, %12 : vector<50x512xf32>
    %c0_9 = arith.constant 0 : index
    %c0_10 = arith.constant 0 : index
    %14 = vector.load %arg4[%c0_9, %c0_10] : memref<1x512xf32, #tpu.memory_space<vmem>>, vector<1x512xf32>
    %15 = vector.broadcast %14 : vector<1x512xf32> to vector<50x512xf32>
    %16 = arith.addf %13, %15 : vector<50x512xf32>
    %c0_11 = arith.constant 0 : index
    %c0_12 = arith.constant 0 : index
    %17 = vector.load %arg5[%c0_11, %c0_12] : memref<50x512xf32, #tpu.memory_space<vmem>>, vector<50x512xf32>
    tpu.vector_store %arg5[%c0_11, %c0_12], %16 {strides = array<i32>} : memref<50x512xf32, #tpu.memory_space<vmem>>, vector<50x512xf32>,
    return
  }
}

module attributes {stable_mosaic.version = 11 : i64} {
  func.func @_phase_conv_out_kernel(%arg0: memref<4x128xf32, #tpu.memory_space<vmem>>, %arg1: memref<128x648xf32, #tpu.memory_space<vmem>>, %arg2: memref<1xf32, #tpu.memory_space<smem>>, %arg3: memref<4x648xf32, #tpu.memory_space<vmem>>) attributes {dimension_semantics = [], scalar_prefetch = 0 : i64, scratch_operands = 0 : i64, tpu.core_type = #tpu.core_type<tc>} {
    %c0 = arith.constant 0 : index
    %c0_0 = arith.constant 0 : index
    %0 = vector.load %arg0[%c0, %c0_0] : memref<4x128xf32, #tpu.memory_space<vmem>>, vector<4x128xf32>
    %c0_1 = arith.constant 0 : index
    %c0_2 = arith.constant 0 : index
    %1 = vector.load %arg1[%c0_1, %c0_2] : memref<128x648xf32, #tpu.memory_space<vmem>>, vector<128x648xf32>
    %cst = arith.constant dense<0.000000e+00> : vector<4x648xf32>
    %2 = tpu.matmul %0, %1, %cst {dimension_numbers = #tpu.dot_dimension_numbers<[1], [0], [0], [1], [0, 0, 1, 1], [], []>} : vector<4x128xf32>, vector<128x648xf32>, vector<4x648xf32> -> vector<4x648xf32>
    %c0_3 = arith.constant 0 : index
    %3 = memref.load %arg2[%c0_3] : memref<1xf32, #tpu.memory_space<smem>>
    %4 = vector.broadcast %3 : f32 to vector<4x648xf32>
    %5 = arith.addf %2, %4 : vector<4x648xf32>
    %6 = arith.negf %5 : vector<4x648xf32>
    %7 = math.exp %6 : vector<4x648xf32>
    %cst_4 = arith.constant 1.000000e+00 : f32
    %8 = vector.broadcast %cst_4 : f32 to vector<4x648xf32>
    %9 = arith.addf %8, %7 : vector<4x648xf32>
    %10 = arith.divf %8, %9 : vector<4x648xf32>
    %c0_5 = arith.constant 0 : index
    %c0_6 = arith.constant 0 : index
    %11 = vector.load %arg3[%c0_5, %c0_6] : memref<4x648xf32, #tpu.memory_space<vmem>>, vector<4x648xf32>
    tpu.vector_store %arg3[%c0_5, %c0_6], %10 {strides = array<i32>} : memref<4x648xf32, #tpu.memory_space<vmem>>, vector<4x648xf32>,
    return
  }
}

</mosaic_0001>

<bundles_post_ra>
// kernel: decoder_forward.4
= control target key start
LH: loop header
LB: loop body
LE: loop exit
PB: predicated region body
PF: predicated region fallthrough
CT: control target
= control target key end

     0   :  { %v544_v3 = vmov 0.0   ;;  %s1006_s1 = inlined_call_operand.vmem [shape: f32[128,512], index: 1, kind: input, shape index: {}]   ;;  %s1007_s0 = inlined_call_operand.vmem [shape: f32[50,128], index: 0, kind: input, shape index: {}]   ;;  %s1008_s2 = inlined_call_operand.vmem [shape: f32[1,512], index: 2, kind: input, shape index: {}]   ;;  %s1009_s3 = inlined_call_operand.vmem [shape: f32[1,512], index: 3, kind: input, shape index: {}]   ;;  %s1010_s4 = inlined_call_operand.vmem [shape: f32[1,512], index: 4, kind: input, shape index: {}]   ;;  %s1011_s5 = inlined_call_operand.vmem [shape: f32[50,512], index: 5, kind: output, shape index: {}]  }
   0x1   :  { %v88_v0 = vld [vmem:[%s1006_s1 + $0x1e8] sm:$0xff]  ;;  %v90_v1 = vld [vmem:[%s1006_s1 + $0x1f8] sm:$0xff]  ;;  %v87_v2 = vld [vmem:[%s1006_s1 + $0x1e0] sm:$0xff]  ;;  %177 = vmatprep.mubr.f32.mxu0 %v544_v3  ;;  %284 = vmatprep.mubr.f32.mxu1 %v544_v3 }
   0x2   :  { %113 = vmatprep.subr.mxu0 %v88_v0  ;;  %220 = vmatprep.subr.mxu1 %v90_v1  ;;  %v89_v4 = vld [vmem:[%s1006_s1 + $0x1f0] sm:$0xff]  ;;  %v84_v5 = vld [vmem:[%s1006_s1 + $0x1c8] sm:$0xff]  ;;  %v86_v6 = vld [vmem:[%s1006_s1 + $0x1d8] sm:$0xff] }
   0x3   :  { %114 = vmatpush1.msra.mxu0 %v87_v2  ;;  %221 = vmatpush1.msra.mxu1 %v89_v4  ;;  %v83_v7 = vld [vmem:[%s1006_s1 + $0x1c0] sm:$0xff]  ;;  %v85_v8 = vld [vmem:[%s1006_s1 + $0x1d0] sm:$0xff]  ;;  %v80_v9 = vld [vmem:[%s1006_s1 + $0x1a8] sm:$0xff] }
   0x4   :  { %115 = vmatprep.subr.mxu0 %v84_v5  ;;  %222 = vmatprep.subr.mxu1 %v86_v6  ;;  %v82_v10 = vld [vmem:[%s1006_s1 + $0x1b8] sm:$0xff]  ;;  %v79_v11 = vld [vmem:[%s1006_s1 + $0x1a0] sm:$0xff]  ;;  %v81_v12 = vld [vmem:[%s1006_s1 + $0x1b0] sm:$0xff] }
   0x5   :  { %116 = vmatpush1.msra.mxu0 %v83_v7  ;;  %223 = vmatpush1.msra.mxu1 %v85_v8  ;;  %v76_v13 = vld [vmem:[%s1006_s1 + $0x188] sm:$0xff]  ;;  %v78_v14 = vld [vmem:[%s1006_s1 + $0x198] sm:$0xff]  ;;  %v75_v15 = vld [vmem:[%s1006_s1 + $0x180] sm:$0xff] }
   0x6   :  { %117 = vmatprep.subr.mxu0 %v80_v9  ;;  %224 = vmatprep.subr.mxu1 %v82_v10  ;;  %v77_v16 = vld [vmem:[%s1006_s1 + $0x190] sm:$0xff]  ;;  %v72_v17 = vld [vmem:[%s1006_s1 + $0x168] sm:$0xff]  ;;  %v74_v18 = vld [vmem:[%s1006_s1 + $0x178] sm:$0xff]  ;;  %v93_v9 = vlaneseq }
   0x7   :  { %118 = vmatpush1.msra.mxu0 %v79_v11  ;;  %225 = vmatpush1.msra.mxu1 %v81_v12  ;;  %v71_v19 = vld [vmem:[%s1006_s1 + $0x160] sm:$0xff]  ;;  %v73_v20 = vld [vmem:[%s1006_s1 + $0x170] sm:$0xff]  ;;  %v68_v21 = vld [vmem:[%s1006_s1 + $0x148] sm:$0xff] }
   0x8   :  { %119 = vmatprep.subr.mxu0 %v76_v13  ;;  %226 = vmatprep.subr.mxu1 %v78_v14  ;;  %v70_v22 = vld [vmem:[%s1006_s1 + $0x158] sm:$0xff]  ;;  %v67_v23 = vld [vmem:[%s1006_s1 + $0x140] sm:$0xff]  ;;  %v69_v24 = vld [vmem:[%s1006_s1 + $0x150] sm:$0xff]  ;;  %v94_v10 = vshrl.u32 %v93_v9, 7 }
   0x9   :  { %120 = vmatpush1.msra.mxu0 %v75_v15  ;;  %227 = vmatpush1.msra.mxu1 %v77_v16  ;;  %v64_v25 = vld [vmem:[%s1006_s1 + $0x128] sm:$0xff]  ;;  %v66_v26 = vld [vmem:[%s1006_s1 + $0x138] sm:$0xff]  ;;  %v63_v27 = vld [vmem:[%s1006_s1 + $0x120] sm:$0xff] }
   0xa   :  { %121 = vmatprep.subr.mxu0 %v72_v17  ;;  %228 = vmatprep.subr.mxu1 %v74_v18  ;;  %v65_v28 = vld [vmem:[%s1006_s1 + $0x130] sm:$0xff]  ;;  %v60_v29 = vld [vmem:[%s1006_s1 + $0x108] sm:$0xff]  ;;  %v62_v30 = vld [vmem:[%s1006_s1 + $0x118] sm:$0xff]  ;;  %v95_v11 = vsub.s32 0, %v94_v10  ;;  %v103_v12 = vsub.s32 2, %v94_v10  ;;  %v99_v14 = vsub.s32 1, %v94_v10 }
   0xb   :  { %122 = vmatpush1.msra.mxu0 %v71_v19  ;;  %229 = vmatpush1.msra.mxu1 %v73_v20  ;;  %v59_v31 = vld [vmem:[%s1006_s1 + $0x100] sm:$0xff]  ;;  %v61_v32 = vld [vmem:[%s1006_s1 + $0x110] sm:$0xff]  ;;  %v56_v33 = vld [vmem:[%s1006_s1 + $0xe8] sm:$0xff]  ;;  %v107_v15 = vsub.s32 3, %v94_v10 }
   0xc   :  { %123 = vmatprep.subr.mxu0 %v68_v21  ;;  %230 = vmatprep.subr.mxu1 %v70_v22  ;;  %v58_v34 = vld [vmem:[%s1006_s1 + $0xf8] sm:$0xff]  ;;  %v55_v35 = vld [vmem:[%s1006_s1 + $0xe0] sm:$0xff]  ;;  %v57_v36 = vld [vmem:[%s1006_s1 + $0xf0] sm:$0xff] }
   0xd   :  { %124 = vmatpush1.msra.mxu0 %v67_v23  ;;  %231 = vmatpush1.msra.mxu1 %v69_v24  ;;  %v52_v37 = vld [vmem:[%s1006_s1 + $0xc8] sm:$0xff]  ;;  %v54_v38 = vld [vmem:[%s1006_s1 + $0xd8] sm:$0xff]  ;;  %v51_v39 = vld [vmem:[%s1006_s1 + $0xc0] sm:$0xff] }
   0xe   :  { %125 = vmatprep.subr.mxu0 %v64_v25  ;;  %232 = vmatprep.subr.mxu1 %v66_v26  ;;  %v53_v40 = vld [vmem:[%s1006_s1 + $0xd0] sm:$0xff]  ;;  %v48_v41 = vld [vmem:[%s1006_s1 + $0xa8] sm:$0xff]  ;;  %v50_v42 = vld [vmem:[%s1006_s1 + $0xb8] sm:$0xff] }
   0xf   :  { %126 = vmatpush1.msra.mxu0 %v63_v27  ;;  %233 = vmatpush1.msra.mxu1 %v65_v28  ;;  %v47_v43 = vld [vmem:[%s1006_s1 + $0xa0] sm:$0xff]  ;;  %v49_v44 = vld [vmem:[%s1006_s1 + $0xb0] sm:$0xff]  ;;  %v44_v45 = vld [vmem:[%s1006_s1 + $0x88] sm:$0xff] }
  0x10   :  { %127 = vmatprep.subr.mxu0 %v60_v29  ;;  %234 = vmatprep.subr.mxu1 %v62_v30  ;;  %v46_v46 = vld [vmem:[%s1006_s1 + $0x98] sm:$0xff]  ;;  %v43_v47 = vld [vmem:[%s1006_s1 + $0x80] sm:$0xff]  ;;  %v45_v48 = vld [vmem:[%s1006_s1 + $0x90] sm:$0xff] }
  0x11   :  { %128 = vmatpush1.msra.mxu0 %v59_v31  ;;  %235 = vmatpush1.msra.mxu1 %v61_v32  ;;  %v40_v49 = vld [vmem:[%s1006_s1 + $0x68] sm:$0xff]  ;;  %v42_v50 = vld [vmem:[%s1006_s1 + $0x78] sm:$0xff]  ;;  %v39_v51 = vld [vmem:[%s1006_s1 + $0x60] sm:$0xff] }
  0x12   :  { %129 = vmatprep.subr.mxu0 %v56_v33  ;;  %236 = vmatprep.subr.mxu1 %v58_v34  ;;  %v41_v52 = vld [vmem:[%s1006_s1 + $0x70] sm:$0xff]  ;;  %v36_v53 = vld [vmem:[%s1006_s1 + $0x48] sm:$0xff]  ;;  %v38_v54 = vld [vmem:[%s1006_s1 + $0x58] sm:$0xff] }
  0x13   :  { %130 = vmatpush1.msra.mxu0 %v55_v35  ;;  %237 = vmatpush1.msra.mxu1 %v57_v36  ;;  %v35_v55 = vld [vmem:[%s1006_s1 + $0x40] sm:$0xff]  ;;  %v37_v56 = vld [vmem:[%s1006_s1 + $0x50] sm:$0xff]  ;;  %v32_v57 = vld [vmem:[%s1006_s1 + $0x28] sm:$0xff] }
  0x14   :  { %131 = vmatprep.subr.mxu0 %v52_v37  ;;  %238 = vmatprep.subr.mxu1 %v54_v38  ;;  %v34_v58 = vld [vmem:[%s1006_s1 + $0x38] sm:$0xff]  ;;  %v31_v59 = vld [vmem:[%s1006_s1 + $0x20] sm:$0xff]  ;;  %v33_v60 = vld [vmem:[%s1006_s1 + $0x30] sm:$0xff] }
  0x15   :  { %132 = vmatpush1.msra.mxu0 %v51_v39  ;;  %239 = vmatpush1.msra.mxu1 %v53_v40  ;;  %v28_v61 = vld [vmem:[%s1006_s1 + $0x8] sm:$0xff]  ;;  %v30_v62 = vld [vmem:[%s1006_s1 + $0x18] sm:$0xff]  ;;  %v27_v63 = vld [vmem:[%s1006_s1] sm:$0xff] }
  0x16   :  { %133 = vmatprep.subr.mxu0 %v48_v41  ;;  %240 = vmatprep.subr.mxu1 %v50_v42  ;;  %v29_v0 = vld [vmem:[%s1006_s1 + $0x10] sm:$0xff]  ;;  %v20_v1 = vld [vmem:[%s1007_s0] sm:$0xff]  ;;  %v21_v2 = vld [vmem:[%s1007_s0 + $0x8] sm:$0xff] }
  0x17   :  { %134 = vmatpush1.msra.mxu0 %v47_v43  ;;  %241 = vmatpush1.msra.mxu1 %v49_v44  ;;  %v22_v4 = vld [vmem:[%s1007_s0 + $0x10] sm:$0xff]  ;;  %v23_v5 = vld [vmem:[%s1007_s0 + $0x18] sm:$0xff]  ;;  %v24_v6 = vld [vmem:[%s1007_s0 + $0x20] sm:$0xff] }
  0x18   :  { %135 = vmatprep.subr.mxu0 %v44_v45  ;;  %242 = vmatprep.subr.mxu1 %v46_v46  ;;  %v25_v7 = vld [vmem:[%s1007_s0 + $0x28] sm:$0xff]  ;;  %v26_v8 = vld [vmem:[%s1007_s0 + $0x30] sm:$0x3]  ;;  %v91_v13 = vld [vmem:[%s1008_s2] sm:$0xf] }
  0x19   :  { %136 = vmatpush1.msra.mxu0 %v43_v47  ;;  %243 = vmatpush1.msra.mxu1 %v45_v48  ;;  %v805_v16 = vrot.slane %v91_v13, %v95_v11  ;;  %v807_v17 = vrot.slane %v91_v13, %v103_v12  ;;  %v461_v18 = vld [vmem:[%s1010_s4] sm:$0xf]  ;;  %v815_v21 = vrot.slane %v91_v13, %v99_v14 }
  0x1a   :  { %137 = vmatprep.subr.mxu0 %v40_v49  ;;  %244 = vmatprep.subr.mxu1 %v42_v50  ;;  %v817_v22 = vrot.slane %v91_v13, %v107_v15  ;;  %v825_v27 = vrot.slane %v461_v18, %v95_v11  ;;  %v827_v28 = vrot.slane %v461_v18, %v103_v12 }
  0x1b   :  { %138 = vmatpush1.msra.mxu0 %v39_v51  ;;  %245 = vmatpush1.msra.mxu1 %v41_v52  ;;  %v834_v36 = vrot.slane %v461_v18, %v99_v14  ;;  %v837_v38 = vrot.slane %v461_v18, %v107_v15 }
  0x1c   :  { %139 = vmatprep.subr.mxu0 %v36_v53  ;;  %246 = vmatprep.subr.mxu1 %v38_v54 }
  0x1d   :  { %140 = vmatpush1.msra.mxu0 %v35_v55  ;;  %247 = vmatpush1.msra.mxu1 %v37_v56 }
  0x1e   :  { %141 = vmatprep.subr.mxu0 %v32_v57  ;;  %248 = vmatprep.subr.mxu1 %v34_v58 }
  0x1f   :  { %142 = vmatpush1.msra.mxu0 %v31_v59  ;;  %249 = vmatpush1.msra.mxu1 %v33_v60 }
  0x20   :  { %143 = vmatprep.subr.mxu0 %v28_v61  ;;  %250 = vmatprep.subr.mxu1 %v30_v62 }
  0x21   :  { %144 = vmatpush1.msra.mxu0 %v27_v63  ;;  %251 = vmatpush1.msra.mxu1 %v29_v0 }
  0x22   :  { %178 = vmatmul.mubr.f32.vlgmr.msra.gmra.mxu0 %v20_v1  ;;  %285 = vmatmul.mubr.f32.vlgmr.msra.gmra.mxu1 %v20_v1 }
  0x23   :  { %183 = vmatprep.mubr.f32.mxu0 %v544_v3  ;;  %290 = vmatprep.mubr.f32.mxu1 %v544_v3 }
  0x26   :  { %184 = vmatmul.mubr.f32.gmra.mxu0 %v21_v2  ;;  %291 = vmatmul.mubr.f32.gmra.mxu1 %v21_v2 }
  0x27   :  { %189 = vmatprep.mubr.f32.mxu0 %v544_v3  ;;  %296 = vmatprep.mubr.f32.mxu1 %v544_v3 }
  0x2a   :  { %190 = vmatmul.mubr.f32.gmra.mxu0 %v22_v4  ;;  %297 = vmatmul.mubr.f32.gmra.mxu1 %v22_v4 }
  0x2b   :  { %195 = vmatprep.mubr.f32.mxu0 %v544_v3  ;;  %302 = vmatprep.mubr.f32.mxu1 %v544_v3 }
  0x2e   :  { %196 = vmatmul.mubr.f32.gmra.mxu0 %v23_v5  ;;  %303 = vmatmul.mubr.f32.gmra.mxu1 %v23_v5 }
  0x2f   :  { %201 = vmatprep.mubr.f32.mxu0 %v544_v3  ;;  %308 = vmatprep.mubr.f32.mxu1 %v544_v3 }
  0x32   :  { %202 = vmatmul.mubr.f32.gmra.mxu0 %v24_v6  ;;  %309 = vmatmul.mubr.f32.gmra.mxu1 %v24_v6 }
  0x33   :  { %207 = vmatprep.mubr.f32.mxu0 %v544_v3  ;;  %314 = vmatprep.mubr.f32.mxu1 %v544_v3 }
  0x36   :  { %208 = vmatmul.mubr.f32.gmra.mxu0 %v25_v7  ;;  %315 = vmatmul.mubr.f32.gmra.mxu1 %v25_v7 }
  0x37   :  { %213 = vmatprep.mubr.f32.mxu0 %v544_v3  ;;  %320 = vmatprep.mubr.f32.mxu1 %v544_v3  ;;  %v411_v3 = vld [vmem:[%s1009_s3] sm:$0xf] }
  0x38   :  { %v820_v24 = vrot.slane %v411_v3, %v95_v11  ;;  %v823_v26 = vrot.slane %v411_v3, %v103_v12  ;;  %v829_v30 = vrot.slane %v411_v3, %v99_v14  ;;  %v831_v32 = vrot.slane %v411_v3, %v107_v15 }
  0x3a   :  { %214 = vmatmul.mubr.f32.gmra.mxu0 %v26_v8  ;;  %321 = vmatmul.mubr.f32.gmra.mxu1 %v26_v8 }
  0xe2   :  { %v179_v19 = vpop.f32.mrf.mxu0  ;;  %v286_v20 = vpop.f32.mrf.mxu1 }
  0xe3   :  { %v180_v23 = vadd.f32 %v179_v19, %v805_v16  ;;  %v287_v25 = vadd.f32 %v286_v20, %v807_v17 }
  0xe4   :  { %v181_v29 = vpop.f32.mrf.mxu0  ;;  %v288_v31 = vpop.f32.mrf.mxu1 }
  0xe5   :  { %vm327_vm0 = vcmp.ge.f32.partialorder %v180_v23, 0.0  ;;  %v355_v33 = vmul.f32 0.01, %v180_v23  ;;  %vm329_vm1 = vcmp.ge.f32.partialorder %v287_v25, 0.0  ;;  %v357_v34 = vmul.f32 0.01, %v287_v25 }
  0xe6   :  { %v182_v35 = vadd.f32 %v181_v29, %v815_v21  ;;  %v289_v37 = vadd.f32 %v288_v31, %v817_v22  ;;  %v185_v39 = vpop.f32.mrf.mxu0  ;;  %v292_v40 = vpop.f32.mrf.mxu1 }
  0xe7   :  { %v383_v41 = vsel %vm327_vm0, %v180_v23, %v355_v33  ;;  %v385_v42 = vsel %vm329_vm1, %v287_v25, %v357_v34  ;;  %v186_v43 = vadd.f32 %v185_v39, %v805_v16  ;;  %v293_v44 = vadd.f32 %v292_v40, %v807_v17 }
  0xe8   :  { %v433_v45 = vmul.f32 %v820_v24, %v383_v41  ;;  %v435_v46 = vmul.f32 %v823_v26, %v385_v42  ;;  %vm328_vm2 = vcmp.ge.f32.partialorder %v182_v35, 0.0  ;;  %v356_v47 = vmul.f32 0.01, %v182_v35  ;;  %v187_v48 = vpop.f32.mrf.mxu0  ;;  %v294_v49 = vpop.f32.mrf.mxu1 }
  0xe9   :  { %vm330_vm3 = vcmp.ge.f32.partialorder %v289_v37, 0.0  ;;  %v358_v50 = vmul.f32 0.01, %v289_v37  ;;  %vm331_vm4 = vcmp.ge.f32.partialorder %v186_v43, 0.0  ;;  %v359_v51 = vmul.f32 0.01, %v186_v43 }
  0xea   :  { %v483_v52 = vadd.f32 %v825_v27, %v433_v45  ;;  %v485_v53 = vadd.f32 %v827_v28, %v435_v46  ;;  %v384_v54 = vsel %vm328_vm2, %v182_v35, %v356_v47  ;;  %vm333_vm5 = vcmp.ge.f32.partialorder %v293_v44, 0.0  ;;  %v191_v55 = vpop.f32.mrf.mxu0  ;;  %v298_v56 = vpop.f32.mrf.mxu1 }
  0xeb   :  { %v434_v57 = vmul.f32 %v829_v30, %v384_v54  ;;  %v386_v58 = vsel %vm330_vm3, %v289_v37, %v358_v50  ;;  %v387_v59 = vsel %vm331_vm4, %v186_v43, %v359_v51  ;;  %v361_v60 = vmul.f32 0.01, %v293_v44 }
  0xec   :  { %511 = vst [vmem:[%s1011_s5] sm:$0xff] %v483_v52  ;;  %513 = vst [vmem:[%s1011_s5 + $0x10] sm:$0xff] %v485_v53  ;;  %v436_v61 = vmul.f32 %v831_v32, %v386_v58  ;;  %v437_v62 = vmul.f32 %v820_v24, %v387_v59  ;;  %v188_v63 = vadd.f32 %v187_v48, %v815_v21  ;;  %v193_v1 = vpop.f32.mrf.mxu0  ;;  %v300_v2 = vpop.f32.mrf.mxu1 }
  0xed   :  { %v295_v0 = vadd.f32 %v294_v49, %v817_v22  ;;  %v484_v4 = vadd.f32 %v834_v36, %v434_v57  ;;  %v389_v5 = vsel %vm333_vm5, %v293_v44, %v361_v60  ;;  %v192_v6 = vadd.f32 %v191_v55, %v805_v16 }
  0xee   :  { %v299_v7 = vadd.f32 %v298_v56, %v807_v17  ;;  %v486_v8 = vadd.f32 %v837_v38, %v436_v61  ;;  %v487_v9 = vadd.f32 %v825_v27, %v437_v62  ;;  %v439_v10 = vmul.f32 %v823_v26, %v389_v5  ;;  %v197_v11 = vpop.f32.mrf.mxu0  ;;  %v304_v12 = vpop.f32.mrf.mxu1 }
  0xef   :  { %vm332_vm6 = vcmp.ge.f32.partialorder %v188_v63, 0.0  ;;  %512 = vst [vmem:[%s1011_s5 + $0x8] sm:$0xff] %v484_v4  ;;  %v360_v13 = vmul.f32 0.01, %v188_v63  ;;  %vm334_vm7 = vcmp.ge.f32.partialorder %v295_v0, 0.0  ;;  %vm335_vm8 = vcmp.ge.f32.partialorder %v192_v6, 0.0 }
  0xf0   :  { %v362_v14 = vmul.f32 0.01, %v295_v0  ;;  %514 = vst [vmem:[%s1011_s5 + $0x18] sm:$0xff] %v486_v8  ;;  %515 = vst [vmem:[%s1011_s5 + $0x20] sm:$0xff] %v487_v9  ;;  %v489_v15 = vadd.f32 %v827_v28, %v439_v10  ;;  %v363_v3 = vmul.f32 0.01, %v192_v6  ;;  %v199_v19 = vpop.f32.mrf.mxu0  ;;  %v306_v20 = vpop.f32.mrf.mxu1  ;;  %v194_v29 = vadd.f32 %v193_v1, %v815_v21 }
  0xf1   :  { %vm337_vm9 = vcmp.ge.f32.partialorder %v299_v7, 0.0  ;;  %v365_v18 = vmul.f32 0.01, %v299_v7  ;;  %v388_v23 = vsel %vm332_vm6, %v188_v63, %v360_v13  ;;  %v301_v31 = vadd.f32 %v300_v2, %v817_v22 }
  0xf2   :  { %v390_v25 = vsel %vm334_vm7, %v295_v0, %v362_v14  ;;  %517 = vst [vmem:[%s1011_s5 + $0x30] sm:$0xff] %v489_v15  ;;  %v438_v33 = vmul.f32 %v829_v30, %v388_v23  ;;  %v391_v35 = vsel %vm335_vm8, %v192_v6, %v363_v3  ;;  %v203_v39 = vpop.f32.mrf.mxu0  ;;  %v310_v40 = vpop.f32.mrf.mxu1  ;;  %vm336_vm10 = vcmp.ge.f32.partialorder %v194_v29, 0.0 }
  0xf3   :  { %v440_v34 = vmul.f32 %v831_v32, %v390_v25  ;;  %v393_v37 = vsel %vm337_vm9, %v299_v7, %v365_v18  ;;  %v441_v41 = vmul.f32 %v820_v24, %v391_v35  ;;  %v364_v43 = vmul.f32 0.01, %v194_v29 }
  0xf4   :  { %v443_v42 = vmul.f32 %v823_v26, %v393_v37  ;;  %v488_v44 = vadd.f32 %v834_v36, %v438_v33  ;;  %vm338_vm11 = vcmp.ge.f32.partialorder %v301_v31, 0.0  ;;  %v366_v46 = vmul.f32 0.01, %v301_v31  ;;  %v205_v55 = vpop.f32.mrf.mxu0  ;;  %v312_v56 = vpop.f32.mrf.mxu1 }
  0xf5   :  { %v490_v45 = vadd.f32 %v837_v38, %v440_v34  ;;  %v491_v47 = vadd.f32 %v825_v27, %v441_v41  ;;  %v392_v49 = vsel %vm336_vm10, %v194_v29, %v364_v43  ;;  %v198_v50 = vadd.f32 %v197_v11, %v805_v16 }
  0xf6   :  { %v493_v48 = vadd.f32 %v827_v28, %v443_v42  ;;  %516 = vst [vmem:[%s1011_s5 + $0x28] sm:$0xff] %v488_v44  ;;  %v442_v51 = vmul.f32 %v829_v30, %v392_v49  ;;  %v394_v52 = vsel %vm338_vm11, %v301_v31, %v366_v46  ;;  %v305_v53 = vadd.f32 %v304_v12, %v807_v17  ;;  %v209_v6 = vpop.f32.mrf.mxu0  ;;  %v316_v7 = vpop.f32.mrf.mxu1 }
  0xf7   :  { %518 = vst [vmem:[%s1011_s5 + $0x38] sm:$0xff] %v490_v45  ;;  %v200_v54 = vadd.f32 %v199_v19, %v815_v21  ;;  %519 = vst [vmem:[%s1011_s5 + $0x40] sm:$0xff] %v491_v47  ;;  %v444_v57 = vmul.f32 %v831_v32, %v394_v52  ;;  %vm339_vm12 = vcmp.ge.f32.partialorder %v198_v50, 0.0  ;;  %v367_v58 = vmul.f32 0.01, %v198_v50 }
  0xf8   :  { %521 = vst [vmem:[%s1011_s5 + $0x50] sm:$0xff] %v493_v48  ;;  %v307_v59 = vadd.f32 %v306_v20, %v817_v22  ;;  %v492_v60 = vadd.f32 %v834_v36, %v442_v51  ;;  %vm341_vm13 = vcmp.ge.f32.partialorder %v305_v53, 0.0  ;;  %v369_v61 = vmul.f32 0.01, %v305_v53  ;;  %v211_v25 = vpop.f32.mrf.mxu0  ;;  %v318_v29 = vpop.f32.mrf.mxu1 }
  0xf9   :  { %vm340_vm14 = vcmp.ge.f32.partialorder %v200_v54, 0.0  ;;  %v494_v62 = vadd.f32 %v837_v38, %v444_v57  ;;  %v395_v63 = vsel %vm339_vm12, %v198_v50, %v367_v58  ;;  %v368_v0 = vmul.f32 0.01, %v200_v54 }
  0xfa   :  { %vm342_vm15 = vcmp.ge.f32.partialorder %v307_v59, 0.0  ;;  %520 = vst [vmem:[%s1011_s5 + $0x48] sm:$0xff] %v492_v60  ;;  %v445_v1 = vmul.f32 %v820_v24, %v395_v63  ;;  %v397_v2 = vsel %vm341_vm13, %v305_v53, %v369_v61  ;;  %v370_v4 = vmul.f32 0.01, %v307_v59  ;;  %v215_v47 = vpop.f32.mrf.mxu0  ;;  %v322_v48 = vpop.f32.mrf.mxu1 }
  0xfb   :  { %v204_v5 = vadd.f32 %v203_v39, %v805_v16  ;;  %522 = vst [vmem:[%s1011_s5 + $0x58] sm:$0xff] %v494_v62  ;;  %v447_v8 = vmul.f32 %v823_v26, %v397_v2  ;;  %v396_v9 = vsel %vm340_vm14, %v200_v54, %v368_v0  ;;  %v311_v10 = vadd.f32 %v310_v40, %v807_v17 }
  0xfc   :  { %v206_v11 = vadd.f32 %v205_v55, %v815_v21  ;;  %v495_v12 = vadd.f32 %v825_v27, %v445_v1  ;;  %v446_v13 = vmul.f32 %v829_v30, %v396_v9  ;;  %v398_v14 = vsel %vm342_vm15, %v307_v59, %v370_v4  ;;  %v217_v0 = vpop.f32.mrf.mxu0  ;;  %v324_v4 = vpop.f32.mrf.mxu1 }
  0xfd   :  { %vm343_vm0 = vcmp.ge.f32.partialorder %v204_v5, 0.0  ;;  %v497_v15 = vadd.f32 %v827_v28, %v447_v8  ;;  %v448_v3 = vmul.f32 %v831_v32, %v398_v14  ;;  %v371_v18 = vmul.f32 0.01, %v204_v5 }
  0xfe   :  { %vm345_vm1 = vcmp.ge.f32.partialorder %v311_v10, 0.0  ;;  %523 = vst [vmem:[%s1011_s5 + $0x60] sm:$0xff] %v495_v12  ;;  %v496_v19 = vadd.f32 %v834_v36, %v446_v13  ;;  %v373_v20 = vmul.f32 0.01, %v311_v10  ;;  %vm344_vm2 = vcmp.ge.f32.partialorder %v206_v11, 0.0 }
  0xff   :  { %v372_v23 = vmul.f32 0.01, %v206_v11  ;;  %525 = vst [vmem:[%s1011_s5 + $0x70] sm:$0xff] %v497_v15  ;;  %v498_v31 = vadd.f32 %v837_v38, %v448_v3  ;;  %v399_v33 = vsel %vm343_vm0, %v204_v5, %v371_v18  ;;  %v313_v34 = vadd.f32 %v312_v56, %v817_v22 }
 0x100   :  { %v210_v35 = vadd.f32 %v209_v6, %v805_v16  ;;  %524 = vst [vmem:[%s1011_s5 + $0x68] sm:$0xff] %v496_v19  ;;  %v449_v37 = vmul.f32 %v820_v24, %v399_v33  ;;  %v401_v39 = vsel %vm345_vm1, %v311_v10, %v373_v20  ;;  %v317_v41 = vadd.f32 %v316_v7, %v807_v17 }
 0x101   :  { %v400_v40 = vsel %vm344_vm2, %v206_v11, %v372_v23  ;;  %526 = vst [vmem:[%s1011_s5 + $0x78] sm:$0xff] %v498_v31  ;;  %v451_v42 = vmul.f32 %v823_v26, %v401_v39  ;;  %vm346_vm3 = vcmp.ge.f32.partialorder %v313_v34, 0.0  ;;  %v374_v44 = vmul.f32 0.01, %v313_v34 }
 0x102   :  { %v450_v43 = vmul.f32 %v829_v30, %v400_v40  ;;  %v499_v45 = vadd.f32 %v825_v27, %v449_v37  ;;  %vm347_vm4 = vcmp.ge.f32.partialorder %v210_v35, 0.0  ;;  %v375_v46 = vmul.f32 0.01, %v210_v35 }
 0x103   :  { %vm349_vm5 = vcmp.ge.f32.partialorder %v317_v41, 0.0  ;;  %v501_v49 = vadd.f32 %v827_v28, %v451_v42  ;;  %v402_v51 = vsel %vm346_vm3, %v313_v34, %v374_v44  ;;  %v377_v52 = vmul.f32 0.01, %v317_v41 }
 0x104   :  { %v500_v50 = vadd.f32 %v834_v36, %v450_v43  ;;  %527 = vst [vmem:[%s1011_s5 + $0x80] sm:$0xff] %v499_v45  ;;  %v452_v53 = vmul.f32 %v831_v32, %v402_v51  ;;  %v403_v54 = vsel %vm347_vm4, %v210_v35, %v375_v46  ;;  %v212_v55 = vadd.f32 %v211_v25, %v815_v21 }
 0x105   :  { %v319_v56 = vadd.f32 %v318_v29, %v817_v22  ;;  %529 = vst [vmem:[%s1011_s5 + $0x90] sm:$0xff] %v501_v49  ;;  %v453_v57 = vmul.f32 %v820_v24, %v403_v54  ;;  %v405_v58 = vsel %vm349_vm5, %v317_v41, %v377_v52  ;;  %v216_v59 = vadd.f32 %v215_v47, %v805_v16 }
 0x106   :  { %528 = vst [vmem:[%s1011_s5 + $0x88] sm:$0xff] %v500_v50  ;;  %v323_v60 = vadd.f32 %v322_v48, %v807_v17  ;;  %v502_v61 = vadd.f32 %v837_v38, %v452_v53  ;;  %v455_v62 = vmul.f32 %v823_v26, %v405_v58  ;;  %vm348_vm6 = vcmp.ge.f32.partialorder %v212_v55, 0.0 }
 0x107   :  { %v376_v63 = vmul.f32 0.01, %v212_v55  ;;  %v503_v1 = vadd.f32 %v825_v27, %v453_v57  ;;  %vm350_vm7 = vcmp.ge.f32.partialorder %v319_v56, 0.0  ;;  %v378_v2 = vmul.f32 0.01, %v319_v56 }
 0x108   :  { %vm351_vm8 = vcmp.ge.f32.partialorder %v216_v59, 0.0  ;;  %530 = vst [vmem:[%s1011_s5 + $0x98] sm:$0xff] %v502_v61  ;;  %v505_v16 = vadd.f32 %v827_v28, %v455_v62  ;;  %v379_v5 = vmul.f32 0.01, %v216_v59  ;;  %vm353_vm9 = vcmp.ge.f32.partialorder %v323_v60, 0.0 }
 0x109   :  { %v404_v17 = vsel %vm348_vm6, %v212_v55, %v376_v63  ;;  %531 = vst [vmem:[%s1011_s5 + $0xa0] sm:$0xff] %v503_v1  ;;  %v406_v7 = vsel %vm350_vm7, %v319_v56, %v378_v2  ;;  %v381_v8 = vmul.f32 0.01, %v323_v60  ;;  %v218_v9 = vadd.f32 %v217_v0, %v815_v21 }
 0x10a   :  { %v454_v6 = vmul.f32 %v829_v30, %v404_v17  ;;  %533 = vst [vmem:[%s1011_s5 + $0xb0] sm:$0xff] %v505_v16  ;;  %v456_v10 = vmul.f32 %v831_v32, %v406_v7  ;;  %v407_v11 = vsel %vm351_vm8, %v216_v59, %v379_v5  ;;  %v325_v12 = vadd.f32 %v324_v4, %v817_v22 }
 0x10b   :  { %v457_v14 = vmul.f32 %v820_v24, %v407_v11  ;;  %v409_v15 = vsel %vm353_vm9, %v323_v60, %v381_v8  ;;  %vm352_vm10 = vcmp.ge.f32.partialorder %v218_v9, 0.0  ;;  %v380_v21 = vmul.f32 0.01, %v218_v9 }
 0x10c   :  { %v504_v13 = vadd.f32 %v834_v36, %v454_v6  ;;  %v506_v3 = vadd.f32 %v837_v38, %v456_v10  ;;  %v459_v18 = vmul.f32 %v823_v26, %v409_v15  ;;  %vm354_vm11 = vcmp.ge.f32.partialorder %v325_v12, 0.0 }
 0x10d   :  { %v507_v19 = vadd.f32 %v825_v27, %v457_v14  ;;  %v382_v20 = vmul.f32 0.01, %v325_v12  ;;  %v408_v24 = vsel %vm352_vm10, %v218_v9, %v380_v21 }
 0x10e   :  { %532 = vst [vmem:[%s1011_s5 + $0xa8] sm:$0xff] %v504_v13  ;;  %534 = vst [vmem:[%s1011_s5 + $0xb8] sm:$0xff] %v506_v3  ;;  %v509_v22 = vadd.f32 %v827_v28, %v459_v18  ;;  %v458_v26 = vmul.f32 %v829_v30, %v408_v24 }
 0x10f   :  { %535 = vst [vmem:[%s1011_s5 + $0xc0] sm:$0x3] %v507_v19  ;;  %v410_v23 = vsel %vm354_vm11, %v325_v12, %v382_v20 }
 0x110   :  { %537 = vst [vmem:[%s1011_s5 + $0xd0] sm:$0x3] %v509_v22  ;;  %v460_v27 = vmul.f32 %v831_v32, %v410_v23  ;;  %v508_v25 = vadd.f32 %v834_v36, %v458_v26 }
 0x112   :  { %v510_v29 = vadd.f32 %v837_v38, %v460_v27  ;;  %536 = vst [vmem:[%s1011_s5 + $0xc8] sm:$0x3] %v508_v25 }
 0x114   :  { %538 = vst [vmem:[%s1011_s5 + $0xd8] sm:$0x3] %v510_v29 }

// kernel: decoder_forward.3
= control target key start
LH: loop header
LB: loop body
LE: loop exit
PB: predicated region body
PF: predicated region fallthrough
CT: control target
= control target key end

     0   :  { %14 = vsyncpa [#allocation3], 0  ;;  %s2119_s0 = inlined_call_operand.hbm [shape: f32[2,16], index: 0, kind: input, shape index: {}]   ;;  %s2120_s1 = inlined_call_operand.hbm [shape: f32[16,800], index: 1, kind: input, shape index: {}]   ;;  %s2121_s2 = inlined_call_operand.hbm [shape: f32[1,800], index: 2, kind: input, shape index: {}]   ;;  %s2122_s3 = inlined_call_operand.hbm [shape: f32[1,800], index: 3, kind: input, shape index: {}]   ;;  %s2123_s4 = inlined_call_operand.hbm [shape: f32[1,800], index: 4, kind: input, shape index: {}]   ;;  %s2124_s5 = inlined_call_operand.hbm [shape: f32[800,512], index: 5, kind: input, shape index: {}]   ;;  %s2125_s6 = inlined_call_operand.hbm [shape: f32[1,512], index: 6, kind: input, shape index: {}]   ;;  %s2126_s7 = inlined_call_operand.hbm [shape: f32[1,512], index: 7, kind: input, shape index: {}]   ;;  %s2127_s8 = inlined_call_operand.hbm [shape: f32[1,512], index: 8, kind: input, shape index: {}]   ;;  %s2128_s9 = inlined_call_operand.vmem [shape: f32[2,512], index: 9, kind: output, shape index: {}]  }
   0x1   :  { %15 = vsyncpa [#allocation5], 0 }
   0x2   :  { %16 = vsyncpa [#allocation8], 0 }
   0x3   :  { %17 = vsyncpa [#allocation11], 0 }
   0x4   :  { %18 = vsyncpa [#allocation14], 0  ;;  %s1900_s30 = smov [#allocation4]  }
   0x5   :  { %s34_s10 = sshll.u32 %s1900_s30, 4  ;;  %s35_s10 = int_to_ptr.vmem [resolvable:$true] %s34_s10 }
   0x6   :  { %s1718_s11 = scalar_lea.vmem %s35_s10, 1792  ;;  %p1723_p1 = scmp.lt.s32.totalorder %s35_s10, %s35_s10 }
   0x7   :  { %p1719_p0 = scmp.ne.s32.totalorder %s35_s10, %s1718_s11  ;;  %p1724_p2 = scmp.lt.s32.totalorder %s1718_s11, %s1718_s11 }
   0x9   :  { %p1725_p3 = por %p1724_p2, %p1723_p1 }
   0xb   :  { %p1726_p4 = pnand %p1725_p3, %p1719_p0 }
   0xd   :  { %1729 = shalt.err (!%p1726_p4)
}
   0xe   :  { %s1901_s12 = smov 896   ;;  %s1902_s13 = smov 56  }
   0xf   :  { %40 = dma.hbm_to_vmem [thread:$0]  %s2120_s1, 1792, %s35_s10, [#allocation5], %s1901_s12, %s1901_s12, %s1902_s13  }
  0x10   :  { %s1903_s16 = smov [#allocation7]   ;;  %s1904_s18 = smov [#allocation10]  }
  0x11   :  { %s57_s17 = sshll.u32 %s1903_s16, 4  ;;  %s76_s19 = sshll.u32 %s1904_s18, 4  ;;  %s58_s17 = int_to_ptr.vmem [resolvable:$true] %s57_s17  ;;  %s77_s19 = int_to_ptr.vmem [resolvable:$true] %s76_s19 }
  0x12   :  { %s1738_s20 = scalar_lea.vmem %s58_s17, 112  ;;  %s1742_s21 = scalar_lea.vmem %s58_s17, 128 }
  0x13   :  { %p1739_p5 = scmp.ne.s32.totalorder %s58_s17, %s1738_s20  ;;  %p1743_p6 = scmp.lt.s32.totalorder %s58_s17, %s58_s17 }
  0x14   :  { %p1744_p7 = scmp.lt.s32.totalorder %s1742_s21, %s1738_s20 }
  0x16   :  { %p1745_p8 = por %p1744_p7, %p1743_p6 }
  0x18   :  { %p1746_p9 = pnand %p1745_p8, %p1739_p5 }
  0x1a   :  { %1749 = shalt.err (!%p1746_p9)
}
  0x1b   :  { %60 = dma.hbm_to_vmem [thread:$0]  %s2122_s3, 112, %s58_s17, [#allocation8]  }
  0x1c   :  { %s1758_s24 = scalar_lea.vmem %s77_s19, 51200  ;;  %p1763_p11 = scmp.lt.s32.totalorder %s77_s19, %s77_s19 }
  0x1d   :  { %p1759_p10 = scmp.ne.s32.totalorder %s77_s19, %s1758_s24  ;;  %p1764_p12 = scmp.lt.s32.totalorder %s1758_s24, %s1758_s24 }
  0x1f   :  { %p1765_p13 = por %p1764_p12, %p1763_p11 }
  0x21   :  { %p1766_p0 = pnand %p1765_p13, %p1759_p10 }
  0x23   :  { %1769 = shalt.err (!%p1766_p0)
}
  0x24   :  { %s1905_s1 = smov 512   ;;  %s1906_s25 = smov 32  }
  0x25   :  { %82 = dma.hbm_to_vmem [thread:$0]  %s2124_s5, 51200, %s77_s19, [#allocation11], %s1905_s1, %s1905_s1, %s1906_s25  }
  0x26   :  { %s1907_s28 = smov [#allocation13]   ;;  %s1908_s30 = smov [#allocation2]  }
  0x27   :  { %s99_s29 = sshll.u32 %s1907_s28, 4  ;;  %s25_s10 = sshll.u32 %s1908_s30, 4  ;;  %s100_s29 = int_to_ptr.vmem [resolvable:$true] %s99_s29  ;;  %s26_s10 = int_to_ptr.vmem [resolvable:$true] %s25_s10 }
  0x28   :  { %s1778_s3 = scalar_lea.vmem %s100_s29, 64  ;;  %p1783_p2 = scmp.lt.s32.totalorder %s100_s29, %s100_s29 }
  0x29   :  { %p1779_p1 = scmp.ne.s32.totalorder %s100_s29, %s1778_s3  ;;  %p1784_p3 = scmp.lt.s32.totalorder %s1778_s3, %s1778_s3 }
  0x2b   :  { %p1785_p4 = por %p1784_p3, %p1783_p2 }
  0x2d   :  { %p1786_p5 = pnand %p1785_p4, %p1779_p1 }
  0x2f   :  { %1789 = shalt.err (!%p1786_p5)
}
  0x30   :  { %102 = dma.hbm_to_vmem [thread:$0]  %s2126_s7, 64, %s100_s29, [#allocation14]  }
  0x31   :  { %s1798_s13 = scalar_lea.vmem %s26_s10, 32  ;;  %p1803_p7 = scmp.lt.s32.totalorder %s26_s10, %s26_s10 }
  0x32   :  { %p1799_p6 = scmp.ne.s32.totalorder %s26_s10, %s1798_s13  ;;  %p1804_p8 = scmp.lt.s32.totalorder %s1798_s13, %s1798_s13 }
  0x34   :  { %p1805_p9 = por %p1804_p8, %p1803_p7 }
  0x36   :  { %p1806_p10 = pnand %p1805_p9, %p1799_p6 }
  0x38   :  { %1809 = shalt.err (!%p1806_p10)
}
  0x39   :  { %28 = dma.hbm_to_vmem [thread:$0]  %s2119_s0, 32, %s26_s10, [#allocation3]  }
  0x3a   :  { %s1909_s15 = smov [#allocation6]   ;;  %s1910_s17 = smov [#allocation9]  }
  0x3b   :  { %s47_s16 = sshll.u32 %s1909_s15, 4  ;;  %s67_s18 = sshll.u32 %s1910_s17, 4  ;;  %s48_s16 = int_to_ptr.vmem [resolvable:$true] %s47_s16  ;;  %s68_s18 = int_to_ptr.vmem [resolvable:$true] %s67_s18 }
  0x3c   :  { %s1818_s19 = scalar_lea.vmem %s48_s16, 112  ;;  %s1822_s7 = scalar_lea.vmem %s48_s16, 128 }
  0x3d   :  { %p1819_p11 = scmp.ne.s32.totalorder %s48_s16, %s1818_s19  ;;  %p1823_p12 = scmp.lt.s32.totalorder %s48_s16, %s48_s16 }
  0x3e   :  { %p1824_p13 = scmp.lt.s32.totalorder %s1822_s7, %s1818_s19 }
  0x40   :  { %p1825_p0 = por %p1824_p13, %p1823_p12 }
  0x42   :  { %p1826_p1 = pnand %p1825_p0, %p1819_p11 }
  0x44   :  { %1829 = shalt.err (!%p1826_p1)
}
  0x45   :  { %50 = dma.hbm_to_vmem [thread:$0]  %s2121_s2, 112, %s48_s16, [#allocation5]  }
  0x46   :  { %s1838_s22 = scalar_lea.vmem %s68_s18, 112  ;;  %s1842_s0 = scalar_lea.vmem %s68_s18, 128 }
  0x47   :  { %p1839_p2 = scmp.ne.s32.totalorder %s68_s18, %s1838_s22  ;;  %p1843_p3 = scmp.lt.s32.totalorder %s68_s18, %s68_s18 }
  0x48   :  { %p1844_p4 = scmp.lt.s32.totalorder %s1842_s0, %s1838_s22 }
  0x4a   :  { %p1845_p5 = por %p1844_p4, %p1843_p3 }
  0x4c   :  { %p1846_p6 = pnand %p1845_p5, %p1839_p2 }
  0x4e   :  { %1849 = shalt.err (!%p1846_p6)
}
  0x4f   :  { %70 = dma.hbm_to_vmem [thread:$0]  %s2123_s4, 112, %s68_s18, [#allocation8]  }
  0x50   :  { %s1911_s1 = smov [#allocation12]   ;;  %s1912_s26 = smov [#allocation15]  }
  0x51   :  { %s89_s25 = sshll.u32 %s1911_s1, 4  ;;  %s109_s27 = sshll.u32 %s1912_s26, 4  ;;  %s90_s25 = int_to_ptr.vmem [resolvable:$true] %s89_s25  ;;  %s110_s27 = int_to_ptr.vmem [resolvable:$true] %s109_s27 }
  0x52   :  { %s1858_s28 = scalar_lea.vmem %s90_s25, 64  ;;  %p1863_p8 = scmp.lt.s32.totalorder %s90_s25, %s90_s25 }
  0x53   :  { %p1859_p7 = scmp.ne.s32.totalorder %s90_s25, %s1858_s28  ;;  %p1864_p9 = scmp.lt.s32.totalorder %s1858_s28, %s1858_s28 }
  0x55   :  { %p1865_p10 = por %p1864_p9, %p1863_p8 }
  0x57   :  { %p1866_p11 = pnand %p1865_p10, %p1859_p7 }
  0x59   :  { %1869 = shalt.err (!%p1866_p11)
}
  0x5a   :  { %92 = dma.hbm_to_vmem [thread:$0]  %s2125_s6, 64, %s90_s25, [#allocation11]  }
  0x5b   :  { %s1878_s30 = scalar_lea.vmem %s110_s27, 64  ;;  %p1883_p13 = scmp.lt.s32.totalorder %s110_s27, %s110_s27 }
  0x5c   :  { %p1879_p12 = scmp.ne.s32.totalorder %s110_s27, %s1878_s30  ;;  %p1884_p0 = scmp.lt.s32.totalorder %s1878_s30, %s1878_s30 }
  0x5e   :  { %p1885_p1 = por %p1884_p0, %p1883_p13 }
  0x60   :  { %p1886_p2 = pnand %p1885_p1, %p1879_p12 }
  0x62   :  { %1889 = shalt.err (!%p1886_p2)
}
  0x63   :  { %112 = dma.hbm_to_vmem [thread:$0]  %s2127_s8, 64, %s110_s27, [#allocation14]  }
  0x64   :  { %1890 = dma.done.wait [#allocation3], 32  }
  0x65   :  { %1891 = vsyncadd [#allocation3], 4294967264 }
  0x66   :  { %1892 = dma.done.wait [#allocation5], 1904  }
  0x67   :  { %1893 = vsyncadd [#allocation5], 4294965392 }
  0x68   :  { %1894 = dma.done.wait [#allocation8], 224  }
  0x69   :  { %1895 = vsyncadd [#allocation8], 4294967072 }
  0x6a   :  { %1896 = dma.done.wait [#allocation11], 51264  }
  0x6b   :  { %1897 = vsyncadd [#allocation11], 4294916032 }
  0x6c   :  { %1898 = dma.done.wait [#allocation14], 128  }
  0x6d   :  { %1899 = vsyncadd [#allocation14], 4294967168  ;;  %v1913_v0 = vmov 0.0   ;;  %v149_v1 = vld [vmem:[#allocation4 + $0x40] sm:$0xff]  ;;  %v151_v2 = vld [vmem:[#allocation4 + $0x50] sm:$0xff]  ;;  %vm192_vm0 = vcmask 130048  }
  0x6e   :  { %260 = vmatprep.mubr.f32.mxu0 %v1913_v0  ;;  %331 = vmatprep.mubr.f32.mxu1 %v1913_v0  ;;  %v148_v3 = vld [vmem:[#allocation4 + $0x38] sm:$0xff]  ;;  %v150_v4 = vld [vmem:[#allocation4 + $0x48] sm:$0xff]  ;;  %v141_v7 = vld [vmem:[#allocation4] sm:$0xff]  ;;  %vm1914_vm1 = vmmov 0   ;;  %vm1010_vm7 = vcmask 261120  }
  0x6f   :  { %224 = vmatprep.subr.mxu0 %v149_v1  ;;  %295 = vmatprep.subr.mxu1 %v151_v2  ;;  %v142_v5 = vld [vmem:[#allocation4 + $0x8] sm:$0xff]  ;;  %v144_v6 = vld [vmem:[#allocation4 + $0x18] sm:$0xff]  ;;  %v143_v8 = vld [vmem:[#allocation4 + $0x10] sm:$0xff] }
  0x70   :  { %225 = vmatpush1.msra.mxu0 %v148_v3  ;;  %296 = vmatpush1.msra.mxu1 %v150_v4  ;;  %v140_v9 = vld [vmem:[#allocation2] sm:$0x3]  ;;  %v154_v10 = vld [vmem:[#allocation4 + $0x68] sm:$0xff]  ;;  %v153_v11 = vld [vmem:[#allocation4 + $0x60] sm:$0xff] }
  0x71   :  { %226 = vmatprep.subr.mxu0 %v142_v5  ;;  %297 = vmatprep.subr.mxu1 %v144_v6  ;;  %v152_v12 = vld [vmem:[#allocation4 + $0x58] sm:$0xff]  ;;  %v147_v13 = vld [vmem:[#allocation4 + $0x30] sm:$0xff]  ;;  %v146_v14 = vld [vmem:[#allocation4 + $0x28] sm:$0xff] }
  0x72   :  { %227 = vmatpush1.msra.mxu0 %v141_v7  ;;  %298 = vmatpush1.msra.mxu1 %v143_v8  ;;  %v145_v15 = vld [vmem:[#allocation4 + $0x20] sm:$0xff]  ;;  %v649_v16 = vld [vmem:[#allocation10 + $0x1e8] sm:$0xff]  ;;  %v648_v18 = vld [vmem:[#allocation10 + $0x1e0] sm:$0xff] }
  0x73   :  { %1678 = vmatmul.mubr.msk.f32.vlgmr.msra.gmra.mxu0 %vm192_vm0, %v140_v9  ;;  %1679 = vmatmul.mubr.msk.f32.vlgmr.msra.gmra.mxu1 %vm192_vm0, %v140_v9  ;;  %v777_v17 = vld [vmem:[#allocation10 + $0x5e8] sm:$0xff]  ;;  %v776_v19 = vld [vmem:[#allocation10 + $0x5e0] sm:$0xff] }
  0x74   :  { %1687 = vmatprep.subr.mxu1 %v1913_v0  ;;  %1691 = vmatprep.mubr.msk.f32.mxu1 %vm1914_vm1, %v1913_v0  ;;  %v645_v20 = vld [vmem:[#allocation10 + $0x1c8] sm:$0xff]  ;;  %v644_v22 = vld [vmem:[#allocation10 + $0x1c0] sm:$0xff] }
  0x75   :  { %1688 = vmatpush3.msra.mxu1 %v154_v10  ;;  %366 = vmatprep.subr.mxu0 %v153_v11  ;;  %v773_v21 = vld [vmem:[#allocation10 + $0x5c8] sm:$0xff]  ;;  %v772_v23 = vld [vmem:[#allocation10 + $0x5c0] sm:$0xff] }
  0x76   :  { %1689 = vmatprep.subr.mxu1 %v1913_v0  ;;  %367 = vmatpush1.msra.mxu0 %v152_v12  ;;  %v641_v24 = vld [vmem:[#allocation10 + $0x1a8] sm:$0xff]  ;;  %v640_v26 = vld [vmem:[#allocation10 + $0x1a0] sm:$0xff] }
  0x77   :  { %1690 = vmatpush3.msra.mxu1 %v147_v13  ;;  %368 = vmatprep.subr.mxu0 %v146_v14  ;;  %v769_v25 = vld [vmem:[#allocation10 + $0x5a8] sm:$0xff]  ;;  %v768_v27 = vld [vmem:[#allocation10 + $0x5a0] sm:$0xff] }
  0x78   :  { %1692 = vmatmul.mubr.msk.f32.vlgmr.msra.gmra.mxu1 %vm192_vm0, %v140_v9  ;;  %369 = vmatpush1.msra.mxu0 %v145_v15  ;;  %v637_v28 = vld [vmem:[#allocation10 + $0x188] sm:$0xff]  ;;  %v636_v30 = vld [vmem:[#allocation10 + $0x180] sm:$0xff] }
  0x79   :  { %402 = vmatprep.mubr.f32.mxu0 %v1913_v0  ;;  %1014 = vmatprep.subr.mxu0 %v649_v16  ;;  %v765_v29 = vld [vmem:[#allocation10 + $0x588] sm:$0xff]  ;;  %v764_v31 = vld [vmem:[#allocation10 + $0x580] sm:$0xff] }
  0x7a   :  { %1680 = vmatmul.mubr.msk.f32.vlgmr.msra.gmra.mxu0 %vm192_vm0, %v140_v9  ;;  %1085 = vmatprep.subr.mxu1 %v777_v17  ;;  %v633_v32 = vld [vmem:[#allocation10 + $0x168] sm:$0xff]  ;;  %v632_v34 = vld [vmem:[#allocation10 + $0x160] sm:$0xff] }
  0x7b   :  { %1015 = vmatpush1.msra.mxu0 %v648_v18  ;;  %1086 = vmatpush1.msra.mxu1 %v776_v19  ;;  %v761_v33 = vld [vmem:[#allocation10 + $0x568] sm:$0xff]  ;;  %v760_v35 = vld [vmem:[#allocation10 + $0x560] sm:$0xff] }
  0x7c   :  { %1016 = vmatprep.subr.mxu0 %v645_v20  ;;  %1087 = vmatprep.subr.mxu1 %v773_v21  ;;  %v629_v36 = vld [vmem:[#allocation10 + $0x148] sm:$0xff]  ;;  %v628_v38 = vld [vmem:[#allocation10 + $0x140] sm:$0xff] }
  0x7d   :  { %1017 = vmatpush1.msra.mxu0 %v644_v22  ;;  %1088 = vmatpush1.msra.mxu1 %v772_v23  ;;  %v757_v37 = vld [vmem:[#allocation10 + $0x548] sm:$0xff]  ;;  %v756_v39 = vld [vmem:[#allocation10 + $0x540] sm:$0xff] }
  0x7e   :  { %1018 = vmatprep.subr.mxu0 %v641_v24  ;;  %1089 = vmatprep.subr.mxu1 %v769_v25  ;;  %v625_v40 = vld [vmem:[#allocation10 + $0x128] sm:$0xff]  ;;  %v624_v42 = vld [vmem:[#allocation10 + $0x120] sm:$0xff] }
  0x7f   :  { %1019 = vmatpush1.msra.mxu0 %v640_v26  ;;  %1090 = vmatpush1.msra.mxu1 %v768_v27  ;;  %v753_v41 = vld [vmem:[#allocation10 + $0x528] sm:$0xff]  ;;  %v752_v43 = vld [vmem:[#allocation10 + $0x520] sm:$0xff] }
  0x80   :  { %1020 = vmatprep.subr.mxu0 %v637_v28  ;;  %1091 = vmatprep.subr.mxu1 %v765_v29  ;;  %v621_v44 = vld [vmem:[#allocation10 + $0x108] sm:$0xff]  ;;  %v620_v46 = vld [vmem:[#allocation10 + $0x100] sm:$0xff] }
  0x81   :  { %1021 = vmatpush1.msra.mxu0 %v636_v30  ;;  %1092 = vmatpush1.msra.mxu1 %v764_v31  ;;  %v749_v45 = vld [vmem:[#allocation10 + $0x508] sm:$0xff]  ;;  %v748_v47 = vld [vmem:[#allocation10 + $0x500] sm:$0xff] }
  0x82   :  { %1022 = vmatprep.subr.mxu0 %v633_v32  ;;  %1093 = vmatprep.subr.mxu1 %v761_v33  ;;  %v617_v48 = vld [vmem:[#allocation10 + $0xe8] sm:$0xff]  ;;  %v616_v50 = vld [vmem:[#allocation10 + $0xe0] sm:$0xff] }
  0x83   :  { %1023 = vmatpush1.msra.mxu0 %v632_v34  ;;  %1094 = vmatpush1.msra.mxu1 %v760_v35  ;;  %v745_v49 = vld [vmem:[#allocation10 + $0x4e8] sm:$0xff]  ;;  %v744_v51 = vld [vmem:[#allocation10 + $0x4e0] sm:$0xff] }
  0x84   :  { %1024 = vmatprep.subr.mxu0 %v629_v36  ;;  %1095 = vmatprep.subr.mxu1 %v757_v37  ;;  %v613_v52 = vld [vmem:[#allocation10 + $0xc8] sm:$0xff]  ;;  %v612_v54 = vld [vmem:[#allocation10 + $0xc0] sm:$0xff] }
  0x85   :  { %1025 = vmatpush1.msra.mxu0 %v628_v38  ;;  %1096 = vmatpush1.msra.mxu1 %v756_v39  ;;  %v741_v53 = vld [vmem:[#allocation10 + $0x4c8] sm:$0xff]  ;;  %v740_v55 = vld [vmem:[#allocation10 + $0x4c0] sm:$0xff] }
  0x86   :  { %1026 = vmatprep.subr.mxu0 %v625_v40  ;;  %1097 = vmatprep.subr.mxu1 %v753_v41  ;;  %v609_v56 = vld [vmem:[#allocation10 + $0xa8] sm:$0xff]  ;;  %v608_v58 = vld [vmem:[#allocation10 + $0xa0] sm:$0xff] }
  0x87   :  { %1027 = vmatpush1.msra.mxu0 %v624_v42  ;;  %1098 = vmatpush1.msra.mxu1 %v752_v43  ;;  %v737_v57 = vld [vmem:[#allocation10 + $0x4a8] sm:$0xff]  ;;  %v736_v59 = vld [vmem:[#allocation10 + $0x4a0] sm:$0xff] }
  0x88   :  { %1028 = vmatprep.subr.mxu0 %v621_v44  ;;  %1099 = vmatprep.subr.mxu1 %v749_v45  ;;  %v605_v60 = vld [vmem:[#allocation10 + $0x88] sm:$0xff]  ;;  %v604_v62 = vld [vmem:[#allocation10 + $0x80] sm:$0xff] }
  0x89   :  { %1029 = vmatpush1.msra.mxu0 %v620_v46  ;;  %1100 = vmatpush1.msra.mxu1 %v748_v47  ;;  %v733_v61 = vld [vmem:[#allocation10 + $0x488] sm:$0xff]  ;;  %v732_v63 = vld [vmem:[#allocation10 + $0x480] sm:$0xff] }
  0x8a   :  { %1030 = vmatprep.subr.mxu0 %v617_v48  ;;  %1101 = vmatprep.subr.mxu1 %v745_v49  ;;  %v601_v1 = vld [vmem:[#allocation10 + $0x68] sm:$0xff]  ;;  %v600_v3 = vld [vmem:[#allocation10 + $0x60] sm:$0xff] }
  0x8b   :  { %1031 = vmatpush1.msra.mxu0 %v616_v50  ;;  %1102 = vmatpush1.msra.mxu1 %v744_v51  ;;  %v729_v2 = vld [vmem:[#allocation10 + $0x468] sm:$0xff]  ;;  %v728_v4 = vld [vmem:[#allocation10 + $0x460] sm:$0xff] }
  0x8c   :  { %1032 = vmatprep.subr.mxu0 %v613_v52  ;;  %1103 = vmatprep.subr.mxu1 %v741_v53  ;;  %v597_v5 = vld [vmem:[#allocation10 + $0x48] sm:$0xff]  ;;  %v596_v7 = vld [vmem:[#allocation10 + $0x40] sm:$0xff] }
  0x8d   :  { %1033 = vmatpush1.msra.mxu0 %v612_v54  ;;  %1104 = vmatpush1.msra.mxu1 %v740_v55  ;;  %v725_v6 = vld [vmem:[#allocation10 + $0x448] sm:$0xff]  ;;  %v724_v8 = vld [vmem:[#allocation10 + $0x440] sm:$0xff] }
  0x8e   :  { %1034 = vmatprep.subr.mxu0 %v609_v56  ;;  %1105 = vmatprep.subr.mxu1 %v737_v57  ;;  %v593_v9 = vld [vmem:[#allocation10 + $0x28] sm:$0xff]  ;;  %v592_v11 = vld [vmem:[#allocation10 + $0x20] sm:$0xff] }
  0x8f   :  { %1035 = vmatpush1.msra.mxu0 %v608_v58  ;;  %1106 = vmatpush1.msra.mxu1 %v736_v59  ;;  %v721_v10 = vld [vmem:[#allocation10 + $0x428] sm:$0xff]  ;;  %v720_v12 = vld [vmem:[#allocation10 + $0x420] sm:$0xff] }
  0x90   :  { %1036 = vmatprep.subr.mxu0 %v605_v60  ;;  %1107 = vmatprep.subr.mxu1 %v733_v61  ;;  %v589_v13 = vld [vmem:[#allocation10 + $0x8] sm:$0xff]  ;;  %v588_v15 = vld [vmem:[#allocation10] sm:$0xff] }
  0x91   :  { %1037 = vmatpush1.msra.mxu0 %v604_v62  ;;  %1108 = vmatpush1.msra.mxu1 %v732_v63  ;;  %v717_v14 = vld [vmem:[#allocation10 + $0x408] sm:$0xff]  ;;  %v716_v16 = vld [vmem:[#allocation10 + $0x400] sm:$0xff] }
  0x92   :  { %1038 = vmatprep.subr.mxu0 %v601_v1  ;;  %1109 = vmatprep.subr.mxu1 %v729_v2  ;;  %v713_v17 = vld [vmem:[#allocation10 + $0x3e8] sm:$0xff]  ;;  %v712_v19 = vld [vmem:[#allocation10 + $0x3e0] sm:$0xff] }
  0x93   :  { %1039 = vmatpush1.msra.mxu0 %v600_v3  ;;  %1110 = vmatpush1.msra.mxu1 %v728_v4  ;;  %v841_v18 = vld [vmem:[#allocation10 + $0x7e8] sm:$0xff]  ;;  %v840_v20 = vld [vmem:[#allocation10 + $0x7e0] sm:$0xff] }
  0x94   :  { %1040 = vmatprep.subr.mxu0 %v597_v5  ;;  %1111 = vmatprep.subr.mxu1 %v725_v6  ;;  %v709_v21 = vld [vmem:[#allocation10 + $0x3c8] sm:$0xff]  ;;  %v708_v23 = vld [vmem:[#allocation10 + $0x3c0] sm:$0xff] }
  0x95   :  { %1041 = vmatpush1.msra.mxu0 %v596_v7  ;;  %1112 = vmatpush1.msra.mxu1 %v724_v8  ;;  %v837_v22 = vld [vmem:[#allocation10 + $0x7c8] sm:$0xff]  ;;  %v836_v24 = vld [vmem:[#allocation10 + $0x7c0] sm:$0xff] }
  0x96   :  { %1042 = vmatprep.subr.mxu0 %v593_v9  ;;  %1113 = vmatprep.subr.mxu1 %v721_v10  ;;  %v705_v25 = vld [vmem:[#allocation10 + $0x3a8] sm:$0xff]  ;;  %v704_v27 = vld [vmem:[#allocation10 + $0x3a0] sm:$0xff] }
  0x97   :  { %1043 = vmatpush1.msra.mxu0 %v592_v11  ;;  %1114 = vmatpush1.msra.mxu1 %v720_v12  ;;  %v833_v26 = vld [vmem:[#allocation10 + $0x7a8] sm:$0xff]  ;;  %v832_v28 = vld [vmem:[#allocation10 + $0x7a0] sm:$0xff] }
  0x98   :  { %1044 = vmatprep.subr.mxu0 %v589_v13  ;;  %1115 = vmatprep.subr.mxu1 %v717_v14  ;;  %v701_v29 = vld [vmem:[#allocation10 + $0x388] sm:$0xff]  ;;  %v700_v31 = vld [vmem:[#allocation10 + $0x380] sm:$0xff] }
  0x99   :  { %1045 = vmatpush1.msra.mxu0 %v588_v15  ;;  %1116 = vmatpush1.msra.mxu1 %v716_v16  ;;  %v829_v30 = vld [vmem:[#allocation10 + $0x788] sm:$0xff]  ;;  %v828_v32 = vld [vmem:[#allocation10 + $0x780] sm:$0xff] }
  0x9a   :  { %1046 = vmatprep.subr.mxu0 %v713_v17  ;;  %1117 = vmatprep.subr.mxu1 %v841_v18  ;;  %v697_v33 = vld [vmem:[#allocation10 + $0x368] sm:$0xff]  ;;  %v696_v35 = vld [vmem:[#allocation10 + $0x360] sm:$0xff] }
  0x9b   :  { %1047 = vmatpush2.msra.mxu0 %v712_v19  ;;  %1118 = vmatpush2.msra.mxu1 %v840_v20  ;;  %v825_v34 = vld [vmem:[#allocation10 + $0x768] sm:$0xff]  ;;  %v824_v36 = vld [vmem:[#allocation10 + $0x760] sm:$0xff]  ;;  %v157_v20 = vlaneseq }
  0x9c   :  { %1048 = vmatprep.subr.mxu0 %v709_v21  ;;  %1119 = vmatprep.subr.mxu1 %v837_v22  ;;  %v693_v37 = vld [vmem:[#allocation10 + $0x348] sm:$0xff]  ;;  %v692_v39 = vld [vmem:[#allocation10 + $0x340] sm:$0xff] }
  0x9d   :  { %1049 = vmatpush2.msra.mxu0 %v708_v23  ;;  %1120 = vmatpush2.msra.mxu1 %v836_v24  ;;  %v821_v38 = vld [vmem:[#allocation10 + $0x748] sm:$0xff]  ;;  %v820_v40 = vld [vmem:[#allocation10 + $0x740] sm:$0xff]  ;;  %v2003_v21 = vshrl.u32 %v157_v20, 7 }
  0x9e   :  { %1050 = vmatprep.subr.mxu0 %v705_v25  ;;  %1121 = vmatprep.subr.mxu1 %v833_v26  ;;  %v689_v41 = vld [vmem:[#allocation10 + $0x328] sm:$0xff]  ;;  %v688_v43 = vld [vmem:[#allocation10 + $0x320] sm:$0xff] }
  0x9f   :  { %1051 = vmatpush2.msra.mxu0 %v704_v27  ;;  %1122 = vmatpush2.msra.mxu1 %v832_v28  ;;  %v817_v42 = vld [vmem:[#allocation10 + $0x728] sm:$0xff]  ;;  %v816_v44 = vld [vmem:[#allocation10 + $0x720] sm:$0xff]  ;;  %v2006_v22 = vsub.s32 0, %v2003_v21  ;;  %v2009_v23 = vsub.s32 2, %v2003_v21  ;;  %v2014_v25 = vsub.s32 1, %v2003_v21  ;;  %v2017_v26 = vsub.s32 3, %v2003_v21 }
  0xa0   :  { %1052 = vmatprep.subr.mxu0 %v701_v29  ;;  %1123 = vmatprep.subr.mxu1 %v829_v30  ;;  %v685_v45 = vld [vmem:[#allocation10 + $0x308] sm:$0xff]  ;;  %v684_v47 = vld [vmem:[#allocation10 + $0x300] sm:$0xff]  ;;  %v2024_v29 = vsub.s32 6, %v2003_v21 }
  0xa1   :  { %1053 = vmatpush2.msra.mxu0 %v700_v31  ;;  %1124 = vmatpush2.msra.mxu1 %v828_v32  ;;  %v813_v46 = vld [vmem:[#allocation10 + $0x708] sm:$0xff]  ;;  %v812_v48 = vld [vmem:[#allocation10 + $0x700] sm:$0xff] }
  0xa2   :  { %1054 = vmatprep.subr.mxu0 %v697_v33  ;;  %1125 = vmatprep.subr.mxu1 %v825_v34  ;;  %v681_v49 = vld [vmem:[#allocation10 + $0x2e8] sm:$0xff]  ;;  %v680_v51 = vld [vmem:[#allocation10 + $0x2e0] sm:$0xff] }
  0xa3   :  { %1055 = vmatpush2.msra.mxu0 %v696_v35  ;;  %1126 = vmatpush2.msra.mxu1 %v824_v36  ;;  %v809_v50 = vld [vmem:[#allocation10 + $0x6e8] sm:$0xff]  ;;  %v808_v52 = vld [vmem:[#allocation10 + $0x6e0] sm:$0xff]  ;;  %v2030_v35 = vld [vmem:[#allocation7] sm:$0x7f] }
  0xa4   :  { %1056 = vmatprep.subr.mxu0 %v693_v37  ;;  %1127 = vmatprep.subr.mxu1 %v821_v38  ;;  %v677_v53 = vld [vmem:[#allocation10 + $0x2c8] sm:$0xff]  ;;  %v676_v55 = vld [vmem:[#allocation10 + $0x2c0] sm:$0xff] }
  0xa5   :  { %1057 = vmatpush2.msra.mxu0 %v692_v39  ;;  %1128 = vmatpush2.msra.mxu1 %v820_v40  ;;  %v805_v54 = vld [vmem:[#allocation10 + $0x6c8] sm:$0xff]  ;;  %v804_v56 = vld [vmem:[#allocation10 + $0x6c0] sm:$0xff]  ;;  %v2034_v40 = vld [vmem:[#allocation9] sm:$0x7f] }
  0xa6   :  { %1058 = vmatprep.subr.mxu0 %v689_v41  ;;  %1129 = vmatprep.subr.mxu1 %v817_v42  ;;  %v673_v57 = vld [vmem:[#allocation10 + $0x2a8] sm:$0xff]  ;;  %v672_v59 = vld [vmem:[#allocation10 + $0x2a0] sm:$0xff] }
  0xa7   :  { %1059 = vmatpush2.msra.mxu0 %v688_v43  ;;  %1130 = vmatpush2.msra.mxu1 %v816_v44  ;;  %v801_v58 = vld [vmem:[#allocation10 + $0x6a8] sm:$0xff]  ;;  %v800_v60 = vld [vmem:[#allocation10 + $0x6a0] sm:$0xff]  ;;  %v505_v43 = vrot.slane %v2030_v35, %v2006_v22  ;;  %v513_v44 = vrot.slane %v2030_v35, %v2009_v23 }
  0xa8   :  { %1060 = vmatprep.subr.mxu0 %v685_v45  ;;  %1131 = vmatprep.subr.mxu1 %v813_v46  ;;  %v669_v61 = vld [vmem:[#allocation10 + $0x288] sm:$0xff]  ;;  %v668_v63 = vld [vmem:[#allocation10 + $0x280] sm:$0xff] }
  0xa9   :  { %1061 = vmatpush2.msra.mxu0 %v684_v47  ;;  %1132 = vmatpush2.msra.mxu1 %v812_v48  ;;  %v797_v62 = vld [vmem:[#allocation10 + $0x688] sm:$0xff]  ;;  %v796_v1 = vld [vmem:[#allocation10 + $0x680] sm:$0xff] }
  0xaa   :  { %1062 = vmatprep.subr.mxu0 %v681_v49  ;;  %1133 = vmatprep.subr.mxu1 %v809_v50  ;;  %v665_v2 = vld [vmem:[#allocation10 + $0x268] sm:$0xff]  ;;  %v664_v4 = vld [vmem:[#allocation10 + $0x260] sm:$0xff]  ;;  %v509_v50 = vrot.slane %v2030_v35, %v2014_v25 }
  0xab   :  { %1063 = vmatpush2.msra.mxu0 %v680_v51  ;;  %1134 = vmatpush2.msra.mxu1 %v808_v52  ;;  %v793_v3 = vld [vmem:[#allocation10 + $0x668] sm:$0xff]  ;;  %v792_v5 = vld [vmem:[#allocation10 + $0x660] sm:$0xff]  ;;  %v517_v51 = vrot.slane %v2030_v35, %v2017_v26 }
  0xac   :  { %1064 = vmatprep.subr.mxu0 %v677_v53  ;;  %1135 = vmatprep.subr.mxu1 %v805_v54  ;;  %v661_v6 = vld [vmem:[#allocation10 + $0x248] sm:$0xff]  ;;  %v660_v8 = vld [vmem:[#allocation10 + $0x240] sm:$0xff]  ;;  %v549_v53 = vrot.slane %v2034_v40, %v2006_v22  ;;  %v557_v54 = vrot.slane %v2034_v40, %v2009_v23 }
  0xad   :  { %1065 = vmatpush2.msra.mxu0 %v676_v55  ;;  %1136 = vmatpush2.msra.mxu1 %v804_v56  ;;  %v789_v7 = vld [vmem:[#allocation10 + $0x648] sm:$0xff]  ;;  %v788_v9 = vld [vmem:[#allocation10 + $0x640] sm:$0xff] }
  0xae   :  { %1066 = vmatprep.subr.mxu0 %v673_v57  ;;  %1137 = vmatprep.subr.mxu1 %v801_v58  ;;  %v657_v10 = vld [vmem:[#allocation10 + $0x228] sm:$0xff]  ;;  %v656_v12 = vld [vmem:[#allocation10 + $0x220] sm:$0xff]  ;;  %v553_v58 = vrot.slane %v2034_v40, %v2014_v25 }
  0xaf   :  { %1067 = vmatpush2.msra.mxu0 %v672_v59  ;;  %1138 = vmatpush2.msra.mxu1 %v800_v60  ;;  %v785_v11 = vld [vmem:[#allocation10 + $0x628] sm:$0xff]  ;;  %v784_v13 = vld [vmem:[#allocation10 + $0x620] sm:$0xff] }
  0xb0   :  { %1068 = vmatprep.subr.mxu0 %v669_v61  ;;  %1139 = vmatprep.subr.mxu1 %v797_v62  ;;  %v653_v14 = vld [vmem:[#allocation10 + $0x208] sm:$0xff]  ;;  %v652_v16 = vld [vmem:[#allocation10 + $0x200] sm:$0xff]  ;;  %v561_v62 = vrot.slane %v2034_v40, %v2017_v26 }
  0xb1   :  { %1069 = vmatpush2.msra.mxu0 %v668_v63  ;;  %1140 = vmatpush2.msra.mxu1 %v796_v1  ;;  %v781_v15 = vld [vmem:[#allocation10 + $0x608] sm:$0xff]  ;;  %v780_v17 = vld [vmem:[#allocation10 + $0x600] sm:$0xff] }
  0xb2   :  { %1070 = vmatprep.subr.mxu0 %v665_v2  ;;  %1141 = vmatprep.subr.mxu1 %v793_v3  ;;  %v905_v18 = vld [vmem:[#allocation10 + $0x9e8] sm:$0xff]  ;;  %v896_v20 = vld [vmem:[#allocation10 + $0x9a0] sm:$0xff] }
  0xb3   :  { %1071 = vmatpush2.msra.mxu0 %v664_v4  ;;  %1142 = vmatpush2.msra.mxu1 %v792_v5  ;;  %v985_v19 = vld [vmem:[#allocation10 + $0xc68] sm:$0xff]  ;;  %v529_v4 = vrot.slane %v2030_v35, %v2024_v29 }
  0xb4   :  { %1072 = vmatprep.subr.mxu0 %v661_v6  ;;  %1143 = vmatprep.subr.mxu1 %v789_v7  ;;  %v2011_v24 = vld [vmem:[#allocation6] sm:$0x7f] }
  0xb5   :  { %1073 = vmatpush2.msra.mxu0 %v660_v8  ;;  %1144 = vmatpush2.msra.mxu1 %v788_v9  ;;  %v160_v27 = vrot.slane %v2011_v24, %v2006_v22  ;;  %v168_v28 = vrot.slane %v2011_v24, %v2009_v23  ;;  %v164_v32 = vrot.slane %v2011_v24, %v2014_v25  ;;  %v904_v9 = vld [vmem:[#allocation10 + $0x9e0] sm:$0xff] }
  0xb6   :  { %1074 = vmatprep.subr.mxu0 %v657_v10  ;;  %1145 = vmatprep.subr.mxu1 %v785_v11  ;;  %v172_v33 = vrot.slane %v2011_v24, %v2017_v26  ;;  %v184_v39 = vrot.slane %v2011_v24, %v2024_v29  ;;  %v984_v11 = vld [vmem:[#allocation10 + $0xc60] sm:$0xff] }
  0xb7   :  { %1075 = vmatpush2.msra.mxu0 %v656_v12  ;;  %1146 = vmatpush2.msra.mxu1 %v784_v13  ;;  %v901_v12 = vld [vmem:[#allocation10 + $0x9c8] sm:$0xff] }
  0xb8   :  { %1076 = vmatprep.subr.mxu0 %v653_v14  ;;  %1147 = vmatprep.subr.mxu1 %v781_v15  ;;  %v981_v13 = vld [vmem:[#allocation10 + $0xc48] sm:$0xff]  ;;  %v900_v14 = vld [vmem:[#allocation10 + $0x9c0] sm:$0xff] }
  0xb9   :  { %1077 = vmatpush2.msra.mxu0 %v652_v16  ;;  %1148 = vmatpush2.msra.mxu1 %v780_v17  ;;  %v573_v16 = vrot.slane %v2034_v40, %v2024_v29  ;;  %v980_v17 = vld [vmem:[#allocation10 + $0xc40] sm:$0xff] }
  0xba   :  { %1156 = vmatprep.subr.mxu0 %v905_v18  ;;  %1251 = vmatprep.subr.mxu1 %v985_v19  ;;  %v897_v18 = vld [vmem:[#allocation10 + $0x9a8] sm:$0xff]  ;;  %v972_v29 = vld [vmem:[#allocation10 + $0xc00] sm:$0xff] }
  0xbb   :  { %v977_v19 = vld [vmem:[#allocation10 + $0xc28] sm:$0xff] }
 0x133   :  { %v262_v30 = vpop.f32.mrf.mxu0  ;;  %v333_v31 = vpop.f32.mrf.mxu1 }
 0x134   :  { %v263_v34 = vadd.f32 %v262_v30, %v160_v27  ;;  %v334_v36 = vadd.f32 %v333_v31, %v168_v28  ;;  %v976_v27 = vld [vmem:[#allocation10 + $0xc20] sm:$0xff]  ;;  %v893_v28 = vld [vmem:[#allocation10 + $0x988] sm:$0xff] }
 0x135   :  { %v264_v37 = vpop.f32.mrf.mxu0  ;;  %v335_v38 = vpop.f32.mrf.mxu1  ;;  %v973_v30 = vld [vmem:[#allocation10 + $0xc08] sm:$0xff]  ;;  %v892_v31 = vld [vmem:[#allocation10 + $0x980] sm:$0xff] }
 0x136   :  { %vm479_vm2 = vcmp.ge.f32.partialorder %v263_v34, 0.0  ;;  %v486_v41 = vmul.f32 0.01, %v263_v34  ;;  %vm481_vm3 = vcmp.ge.f32.partialorder %v334_v36, 0.0  ;;  %v488_v42 = vmul.f32 0.01, %v334_v36 }
 0x137   :  { %v265_v45 = vadd.f32 %v264_v37, %v164_v32  ;;  %v336_v46 = vadd.f32 %v335_v38, %v172_v33  ;;  %v889_v33 = vld [vmem:[#allocation10 + $0x968] sm:$0xff]  ;;  %v650_v37 = vld [vmem:[#allocation10 + $0x1f0] sm:$0xff] }
 0x138   :  { %v493_v47 = vsel %vm479_vm2, %v263_v34, %v486_v41  ;;  %v495_v48 = vsel %vm481_vm3, %v334_v36, %v488_v42  ;;  %v475_v49 = vpop.f32.mrf.mxu1  ;;  %v651_v34 = vld [vmem:[#allocation10 + $0x1f8] sm:$0xff]  ;;  %v888_v36 = vld [vmem:[#allocation10 + $0x960] sm:$0xff]  ;;  %v885_v38 = vld [vmem:[#allocation10 + $0x948] sm:$0xff] }
 0x139   :  { %vm480_vm4 = vcmp.ge.f32.partialorder %v265_v45, 0.0  ;;  %v487_v52 = vmul.f32 0.01, %v265_v45  ;;  %vm482_vm5 = vcmp.ge.f32.partialorder %v336_v46, 0.0  ;;  %v489_v55 = vmul.f32 0.01, %v336_v46 }
 0x13a   :  { %v476_v56 = vadd.f32 %v475_v49, %v184_v39  ;;  %v1693_v57 = vpop.f32.mrf.mxu1  ;;  %v537_v59 = vmul.f32 %v505_v43, %v493_v47  ;;  %v539_v60 = vmul.f32 %v513_v44, %v495_v48  ;;  %v647_v39 = vld [vmem:[#allocation10 + $0x1d8] sm:$0xff]  ;;  %v884_v41 = vld [vmem:[#allocation10 + $0x940] sm:$0xff]  ;;  %v646_v42 = vld [vmem:[#allocation10 + $0x1d0] sm:$0xff] }
 0x13b   :  { %v494_v61 = vsel %vm480_vm4, %v265_v45, %v487_v52  ;;  %v496_v63 = vsel %vm482_vm5, %v336_v46, %v489_v55  ;;  %v881_v43 = vld [vmem:[#allocation10 + $0x928] sm:$0xff]  ;;  %v643_v44 = vld [vmem:[#allocation10 + $0x1b8] sm:$0xff]  ;;  %v880_v45 = vld [vmem:[#allocation10 + $0x920] sm:$0xff] }
 0x13c   :  { %vm485_vm6 = vcmp.ge.f32.partialorder %v476_v56, 0.0  ;;  %v492_v1 = vmul.f32 0.01, %v476_v56  ;;  %v538_v2 = vmul.f32 %v509_v50, %v494_v61  ;;  %v540_v3 = vmul.f32 %v517_v51, %v496_v63  ;;  %v642_v46 = vld [vmem:[#allocation10 + $0x1b0] sm:$0xff]  ;;  %v877_v47 = vld [vmem:[#allocation10 + $0x908] sm:$0xff]  ;;  %v639_v48 = vld [vmem:[#allocation10 + $0x198] sm:$0xff] }
 0x13d   :  { %v2056_v8 = vadd.f32 %v549_v53, %v537_v59  ;;  %v2058_v10 = vadd.f32 %v557_v54, %v539_v60  ;;  %v876_v49 = vld [vmem:[#allocation10 + $0x900] sm:$0xff]  ;;  %v638_v50 = vld [vmem:[#allocation10 + $0x190] sm:$0xff]  ;;  %v873_v51 = vld [vmem:[#allocation10 + $0x8e8] sm:$0xff] }
 0x13e   :  { %v582_v5 = vadd.f32 %v553_v58, %v538_v2  ;;  %v499_v6 = vsel %vm485_vm6, %v476_v56, %v492_v1  ;;  %v2054_v7 = vadd.f32 %v561_v62, %v540_v3  ;;  %v635_v52 = vld [vmem:[#allocation10 + $0x178] sm:$0xff]  ;;  %v872_v53 = vld [vmem:[#allocation10 + $0x8e0] sm:$0xff]  ;;  %v634_v54 = vld [vmem:[#allocation10 + $0x170] sm:$0xff] }
 0x13f   :  { %v543_v15 = vmul.f32 %v529_v4, %v499_v6  ;;  %v869_v55 = vld [vmem:[#allocation10 + $0x8c8] sm:$0xff]  ;;  %v631_v56 = vld [vmem:[#allocation10 + $0x158] sm:$0xff]  ;;  %v868_v57 = vld [vmem:[#allocation10 + $0x8c0] sm:$0xff] }
 0x140   :  { %1078 = vmatprep.mubr.f32.mxu0 %v582_v5  ;;  %1149 = vmatprep.mubr.f32.mxu1 %v2054_v7  ;;  %v630_v58 = vld [vmem:[#allocation10 + $0x150] sm:$0xff]  ;;  %v865_v59 = vld [vmem:[#allocation10 + $0x8a8] sm:$0xff]  ;;  %v627_v60 = vld [vmem:[#allocation10 + $0x138] sm:$0xff] }
 0x141   :  { %1079 = vmatmul.mubr.f32.vlgmr.msra.gmra.mxu0 %v2056_v8  ;;  %1150 = vmatmul.mubr.f32.vlgmr.msra.gmra.mxu1 %v2058_v10  ;;  %v2065_v32 = vadd.f32 %v573_v16, %v543_v15  ;;  %v864_v61 = vld [vmem:[#allocation10 + $0x8a0] sm:$0xff]  ;;  %v626_v62 = vld [vmem:[#allocation10 + $0x130] sm:$0xff]  ;;  %v861_v63 = vld [vmem:[#allocation10 + $0x888] sm:$0xff] }
 0x142   :  { %1157 = vmatpush1.msra.mxu0 %v904_v9  ;;  %1252 = vmatpush1.msra.mxu1 %v984_v11  ;;  %v623_v1 = vld [vmem:[#allocation10 + $0x118] sm:$0xff]  ;;  %v860_v2 = vld [vmem:[#allocation10 + $0x880] sm:$0xff]  ;;  %v622_v3 = vld [vmem:[#allocation10 + $0x110] sm:$0xff] }
 0x143   :  { %1158 = vmatprep.subr.mxu0 %v901_v12  ;;  %1253 = vmatprep.subr.mxu1 %v981_v13  ;;  %v857_v4 = vld [vmem:[#allocation10 + $0x868] sm:$0xff]  ;;  %v856_v6 = vld [vmem:[#allocation10 + $0x860] sm:$0xff]  ;;  %v618_v9 = vld [vmem:[#allocation10 + $0xf0] sm:$0xff] }
 0x144   :  { %1159 = vmatpush1.msra.mxu0 %v900_v14  ;;  %1254 = vmatpush1.msra.mxu1 %v980_v17  ;;  %v853_v11 = vld [vmem:[#allocation10 + $0x848] sm:$0xff]  ;;  %v615_v12 = vld [vmem:[#allocation10 + $0xd8] sm:$0xff]  ;;  %v852_v13 = vld [vmem:[#allocation10 + $0x840] sm:$0xff] }
 0x145   :  { %1160 = vmatprep.subr.mxu0 %v897_v18  ;;  %1255 = vmatprep.subr.mxu1 %v977_v19  ;;  %v614_v14 = vld [vmem:[#allocation10 + $0xd0] sm:$0xff]  ;;  %v849_v15 = vld [vmem:[#allocation10 + $0x828] sm:$0xff]  ;;  %v611_v16 = vld [vmem:[#allocation10 + $0xb8] sm:$0xff] }
 0x146   :  { %1161 = vmatpush1.msra.mxu0 %v896_v20  ;;  %1256 = vmatpush1.msra.mxu1 %v976_v27  ;;  %v848_v17 = vld [vmem:[#allocation10 + $0x820] sm:$0xff]  ;;  %v610_v18 = vld [vmem:[#allocation10 + $0xb0] sm:$0xff]  ;;  %v845_v19 = vld [vmem:[#allocation10 + $0x808] sm:$0xff] }
 0x147   :  { %1162 = vmatprep.subr.mxu0 %v893_v28  ;;  %1257 = vmatprep.subr.mxu1 %v973_v30  ;;  %v607_v20 = vld [vmem:[#allocation10 + $0x98] sm:$0xff]  ;;  %v844_v27 = vld [vmem:[#allocation10 + $0x800] sm:$0xff]  ;;  %v606_v28 = vld [vmem:[#allocation10 + $0x90] sm:$0xff] }
 0x148   :  { %1163 = vmatpush1.msra.mxu0 %v892_v31  ;;  %1258 = vmatpush1.msra.mxu1 %v972_v29  ;;  %v969_v30 = vld [vmem:[#allocation10 + $0xbe8] sm:$0xff]  ;;  %v603_v31 = vld [vmem:[#allocation10 + $0x78] sm:$0xff]  ;;  %v968_v29 = vld [vmem:[#allocation10 + $0xbe0] sm:$0xff] }
 0x149   :  { %1291 = vmatprep.mubr.f32.mxu1 %v1913_v0  ;;  %1164 = vmatprep.subr.mxu0 %v889_v33  ;;  %v602_v33 = vld [vmem:[#allocation10 + $0x70] sm:$0xff] }
 0x14a   :  { %1682 = vmatmul.mubr.msk.f32.vlgmr.msra.gmra.mxu1 %vm1010_vm7, %v2065_v32  ;;  %1298 = vmatprep.subr.mxu1 %v651_v34  ;;  %v965_v34 = vld [vmem:[#allocation10 + $0xbc8] sm:$0xff] }
 0x14b   :  { %1165 = vmatpush1.msra.mxu0 %v888_v36  ;;  %1299 = vmatpush1.msra.mxu1 %v650_v37  ;;  %v599_v36 = vld [vmem:[#allocation10 + $0x58] sm:$0xff]  ;;  %v964_v37 = vld [vmem:[#allocation10 + $0xbc0] sm:$0xff] }
 0x14c   :  { %1362 = vmatprep.mubr.f32.mxu1 %v582_v5  ;;  %1166 = vmatprep.subr.mxu0 %v885_v38  ;;  %v619_v5 = vld [vmem:[#allocation10 + $0xf8] sm:$0xff]  ;;  %v598_v38 = vld [vmem:[#allocation10 + $0x50] sm:$0xff] }
 0x14d   :  { %1300 = vmatprep.subr.mxu1 %v647_v39  ;;  %1167 = vmatpush1.msra.mxu0 %v884_v41  ;;  %v961_v39 = vld [vmem:[#allocation10 + $0xba8] sm:$0xff]  ;;  %v595_v41 = vld [vmem:[#allocation10 + $0x38] sm:$0xff] }
 0x14e   :  { %1301 = vmatpush1.msra.mxu1 %v646_v42  ;;  %1168 = vmatprep.subr.mxu0 %v881_v43  ;;  %v960_v42 = vld [vmem:[#allocation10 + $0xba0] sm:$0xff]  ;;  %v594_v43 = vld [vmem:[#allocation10 + $0x30] sm:$0xff] }
 0x14f   :  { %1302 = vmatprep.subr.mxu1 %v643_v44  ;;  %1169 = vmatpush1.msra.mxu0 %v880_v45  ;;  %v957_v44 = vld [vmem:[#allocation10 + $0xb88] sm:$0xff]  ;;  %v591_v45 = vld [vmem:[#allocation10 + $0x18] sm:$0xff] }
 0x150   :  { %1303 = vmatpush1.msra.mxu1 %v642_v46  ;;  %1170 = vmatprep.subr.mxu0 %v877_v47  ;;  %v2071_v46 = vsub.s32 5, %v2003_v21  ;;  %v956_v47 = vld [vmem:[#allocation10 + $0xb80] sm:$0xff] }
 0x151   :  { %1304 = vmatprep.subr.mxu1 %v639_v48  ;;  %1171 = vmatpush1.msra.mxu0 %v876_v49  ;;  %v590_v48 = vld [vmem:[#allocation10 + $0x10] sm:$0xff]  ;;  %v404_v49 = vpop.f32.mrf.mxu0 }
 0x152   :  { %1305 = vmatpush1.msra.mxu1 %v638_v50  ;;  %1172 = vmatprep.subr.mxu0 %v873_v51  ;;  %v953_v50 = vld [vmem:[#allocation10 + $0xb68] sm:$0xff]  ;;  %v715_v51 = vld [vmem:[#allocation10 + $0x3f8] sm:$0xff] }
 0x153   :  { %1306 = vmatprep.subr.mxu1 %v635_v52  ;;  %1173 = vmatpush1.msra.mxu0 %v872_v53  ;;  %v952_v52 = vld [vmem:[#allocation10 + $0xb60] sm:$0xff]  ;;  %v714_v53 = vld [vmem:[#allocation10 + $0x3f0] sm:$0xff] }
 0x154   :  { %1307 = vmatpush1.msra.mxu1 %v634_v54  ;;  %1174 = vmatprep.subr.mxu0 %v869_v55  ;;  %v949_v54 = vld [vmem:[#allocation10 + $0xb48] sm:$0xff]  ;;  %v711_v55 = vld [vmem:[#allocation10 + $0x3d8] sm:$0xff] }
 0x155   :  { %1308 = vmatprep.subr.mxu1 %v631_v56  ;;  %1175 = vmatpush1.msra.mxu0 %v868_v57  ;;  %v2074_v56 = vsub.s32 4, %v2003_v21  ;;  %v180_v57 = vrot.slane %v2011_v24, %v2071_v46 }
 0x156   :  { %1309 = vmatpush1.msra.mxu1 %v630_v58  ;;  %1176 = vmatprep.subr.mxu0 %v865_v59  ;;  %v948_v58 = vld [vmem:[#allocation10 + $0xb40] sm:$0xff]  ;;  %v710_v59 = vld [vmem:[#allocation10 + $0x3d0] sm:$0xff] }
 0x157   :  { %1310 = vmatprep.subr.mxu1 %v627_v60  ;;  %1177 = vmatpush1.msra.mxu0 %v864_v61  ;;  %v406_v60 = vpop.f32.mrf.mxu0  ;;  %v945_v61 = vld [vmem:[#allocation10 + $0xb28] sm:$0xff] }
 0x158   :  { %1311 = vmatpush1.msra.mxu1 %v626_v62  ;;  %1178 = vmatprep.subr.mxu0 %v861_v63  ;;  %v707_v62 = vld [vmem:[#allocation10 + $0x3b8] sm:$0xff]  ;;  %v944_v63 = vld [vmem:[#allocation10 + $0xb20] sm:$0xff] }
 0x159   :  { %1312 = vmatprep.subr.mxu1 %v623_v1  ;;  %1179 = vmatpush1.msra.mxu0 %v860_v2  ;;  %v706_v1 = vld [vmem:[#allocation10 + $0x3b0] sm:$0xff]  ;;  %v941_v2 = vld [vmem:[#allocation10 + $0xb08] sm:$0xff] }
 0x15a   :  { %1313 = vmatpush1.msra.mxu1 %v622_v3  ;;  %1180 = vmatprep.subr.mxu0 %v857_v4  ;;  %v703_v3 = vld [vmem:[#allocation10 + $0x398] sm:$0xff]  ;;  %v176_v4 = vrot.slane %v2011_v24, %v2074_v56  ;;  %v932_v24 = vld [vmem:[#allocation10 + $0xac0] sm:$0xff] }
 0x15b   :  { %1314 = vmatprep.subr.mxu1 %v619_v5  ;;  %1181 = vmatpush1.msra.mxu0 %v856_v6  ;;  %v407_v5 = vadd.f32 %v406_v60, %v180_v57  ;;  %v940_v6 = vld [vmem:[#allocation10 + $0xb00] sm:$0xff]  ;;  %v674_v57 = vld [vmem:[#allocation10 + $0x2b0] sm:$0xff]  ;;  %v671_v60 = vld [vmem:[#allocation10 + $0x298] sm:$0xff] }
 0x15c   :  { %1315 = vmatpush1.msra.mxu1 %v618_v9  ;;  %1182 = vmatprep.subr.mxu0 %v853_v11  ;;  %v702_v9 = vld [vmem:[#allocation10 + $0x390] sm:$0xff]  ;;  %v937_v11 = vld [vmem:[#allocation10 + $0xae8] sm:$0xff] }
 0x15d   :  { %1316 = vmatprep.subr.mxu1 %v615_v12  ;;  %1183 = vmatpush1.msra.mxu0 %v852_v13  ;;  %v699_v12 = vld [vmem:[#allocation10 + $0x378] sm:$0xff]  ;;  %v936_v13 = vld [vmem:[#allocation10 + $0xae0] sm:$0xff]  ;;  %vm484_vm8 = vcmp.ge.f32.partialorder %v407_v5, 0.0 }
 0x15e   :  { %1317 = vmatpush1.msra.mxu1 %v614_v14  ;;  %1184 = vmatprep.subr.mxu0 %v849_v15  ;;  %v698_v14 = vld [vmem:[#allocation10 + $0x370] sm:$0xff]  ;;  %v405_v15 = vadd.f32 %v404_v49, %v176_v4  ;;  %v917_v49 = vld [vmem:[#allocation10 + $0xa48] sm:$0xff]  ;;  %v775_v4 = vld [vmem:[#allocation10 + $0x5d8] sm:$0xff] }
 0x15f   :  { %1318 = vmatprep.subr.mxu1 %v611_v16  ;;  %1185 = vmatpush1.msra.mxu0 %v848_v17  ;;  %v933_v16 = vld [vmem:[#allocation10 + $0xac8] sm:$0xff]  ;;  %v695_v17 = vld [vmem:[#allocation10 + $0x358] sm:$0xff] }
 0x160   :  { %1319 = vmatpush1.msra.mxu1 %v610_v18  ;;  %1186 = vmatprep.subr.mxu0 %v845_v19  ;;  %v491_v18 = vmul.f32 0.01, %v407_v5  ;;  %v694_v19 = vld [vmem:[#allocation10 + $0x350] sm:$0xff]  ;;  %vm483_vm9 = vcmp.ge.f32.partialorder %v405_v15, 0.0 }
 0x161   :  { %1320 = vmatprep.subr.mxu1 %v607_v20  ;;  %1187 = vmatpush1.msra.mxu0 %v844_v27  ;;  %v929_v20 = vld [vmem:[#allocation10 + $0xaa8] sm:$0xff]  ;;  %v691_v27 = vld [vmem:[#allocation10 + $0x338] sm:$0xff] }
 0x162   :  { %1321 = vmatpush1.msra.mxu1 %v606_v28  ;;  %1188 = vmatprep.subr.mxu0 %v969_v30  ;;  %v928_v28 = vld [vmem:[#allocation10 + $0xaa0] sm:$0xff]  ;;  %v690_v30 = vld [vmem:[#allocation10 + $0x330] sm:$0xff] }
 0x163   :  { %1322 = vmatprep.subr.mxu1 %v603_v31  ;;  %1189 = vmatpush2.msra.mxu0 %v968_v29  ;;  %v525_v31 = vrot.slane %v2030_v35, %v2071_v46  ;;  %v490_v29 = vmul.f32 0.01, %v405_v15 }
 0x164   :  { %1323 = vmatpush1.msra.mxu1 %v602_v33  ;;  %1190 = vmatprep.subr.mxu0 %v965_v34  ;;  %v498_v33 = vsel %vm484_vm8, %v407_v5, %v491_v18  ;;  %v925_v34 = vld [vmem:[#allocation10 + $0xa88] sm:$0xff]  ;;  %v662_v5 = vld [vmem:[#allocation10 + $0x250] sm:$0xff]  ;;  %v763_v18 = vld [vmem:[#allocation10 + $0x578] sm:$0xff] }
 0x165   :  { %1324 = vmatprep.subr.mxu1 %v599_v36  ;;  %1191 = vmatpush2.msra.mxu0 %v964_v37  ;;  %v687_v36 = vld [vmem:[#allocation10 + $0x318] sm:$0xff]  ;;  %v924_v37 = vld [vmem:[#allocation10 + $0xa80] sm:$0xff] }
 0x166   :  { %1325 = vmatpush1.msra.mxu1 %v598_v38  ;;  %1192 = vmatprep.subr.mxu0 %v961_v39  ;;  %v686_v38 = vld [vmem:[#allocation10 + $0x310] sm:$0xff]  ;;  %v921_v39 = vld [vmem:[#allocation10 + $0xa68] sm:$0xff] }
 0x167   :  { %1326 = vmatprep.subr.mxu1 %v595_v41  ;;  %1193 = vmatpush2.msra.mxu0 %v960_v42  ;;  %v683_v41 = vld [vmem:[#allocation10 + $0x2f8] sm:$0xff]  ;;  %v521_v42 = vrot.slane %v2030_v35, %v2074_v56  ;;  %v913_v35 = vld [vmem:[#allocation10 + $0xa28] sm:$0xff] }
 0x168   :  { %1327 = vmatpush1.msra.mxu1 %v594_v43  ;;  %1194 = vmatprep.subr.mxu0 %v957_v44  ;;  %v920_v43 = vld [vmem:[#allocation10 + $0xa60] sm:$0xff]  ;;  %v682_v44 = vld [vmem:[#allocation10 + $0x2f0] sm:$0xff] }
 0x169   :  { %1328 = vmatprep.subr.mxu1 %v591_v45  ;;  %1195 = vmatpush2.msra.mxu0 %v956_v47  ;;  %v542_v45 = vmul.f32 %v525_v31, %v498_v33  ;;  %v569_v47 = vrot.slane %v2034_v40, %v2071_v46  ;;  %v755_v31 = vld [vmem:[#allocation10 + $0x538] sm:$0xff]  ;;  %v754_v33 = vld [vmem:[#allocation10 + $0x530] sm:$0xff] }
 0x16a   :  { %1329 = vmatpush1.msra.mxu1 %v590_v48  ;;  %1196 = vmatprep.subr.mxu0 %v953_v50  ;;  %v497_v48 = vsel %vm483_vm9, %v405_v15, %v490_v29  ;;  %v679_v50 = vld [vmem:[#allocation10 + $0x2d8] sm:$0xff] }
 0x16b   :  { %1330 = vmatprep.subr.mxu1 %v715_v51  ;;  %1197 = vmatpush2.msra.mxu0 %v952_v52  ;;  %v916_v51 = vld [vmem:[#allocation10 + $0xa40] sm:$0xff]  ;;  %v678_v52 = vld [vmem:[#allocation10 + $0x2d0] sm:$0xff]  ;;  %v2087_v46 = vadd.f32 %v569_v47, %v542_v45  ;;  %v767_v15 = vld [vmem:[#allocation10 + $0x598] sm:$0xff] }
 0x16c   :  { %1331 = vmatpush2.msra.mxu1 %v714_v53  ;;  %1198 = vmatprep.subr.mxu0 %v949_v54  ;;  %v675_v53 = vld [vmem:[#allocation10 + $0x2b8] sm:$0xff]  ;;  %v541_v54 = vmul.f32 %v521_v42, %v497_v48  ;;  %v746_v42 = vld [vmem:[#allocation10 + $0x4f0] sm:$0xff] }
 0x16d   :  { %1332 = vmatprep.subr.mxu1 %v711_v55  ;;  %1199 = vmatpush2.msra.mxu0 %v948_v58  ;;  %v912_v55 = vld [vmem:[#allocation10 + $0xa20] sm:$0xff]  ;;  %v565_v58 = vrot.slane %v2034_v40, %v2074_v56  ;;  %v666_v40 = vld [vmem:[#allocation10 + $0x270] sm:$0xff]  ;;  %v899_v29 = vld [vmem:[#allocation10 + $0x9b8] sm:$0xff] }
 0x16e   :  { %1333 = vmatpush2.msra.mxu1 %v710_v59  ;;  %1200 = vmatprep.subr.mxu0 %v945_v61  ;;  %v909_v59 = vld [vmem:[#allocation10 + $0xa08] sm:$0xff]  ;;  %v908_v61 = vld [vmem:[#allocation10 + $0xa00] sm:$0xff]  ;;  %v778_v56 = vld [vmem:[#allocation10 + $0x5f0] sm:$0xff] }
 0x16f   :  { %1334 = vmatprep.subr.mxu1 %v707_v62  ;;  %1201 = vmatpush2.msra.mxu0 %v944_v63  ;;  %v670_v62 = vld [vmem:[#allocation10 + $0x290] sm:$0xff]  ;;  %v2092_v63 = vadd.f32 %v565_v58, %v541_v54  ;;  %v887_v45 = vld [vmem:[#allocation10 + $0x958] sm:$0xff] }
 0x170   :  { %1335 = vmatpush2.msra.mxu1 %v706_v1  ;;  %1202 = vmatprep.subr.mxu0 %v941_v2  ;;  %v667_v1 = vld [vmem:[#allocation10 + $0x278] sm:$0xff]  ;;  %v742_v47 = vld [vmem:[#allocation10 + $0x4d0] sm:$0xff] }
 0x171   :  { %1336 = vmatprep.subr.mxu1 %v703_v3  ;;  %1203 = vmatpush2.msra.mxu0 %v940_v6  ;;  %v779_v2 = vld [vmem:[#allocation10 + $0x5f8] sm:$0xff]  ;;  %v774_v6 = vld [vmem:[#allocation10 + $0x5d0] sm:$0xff] }
 0x172   :  { %1337 = vmatpush2.msra.mxu1 %v702_v9  ;;  %1204 = vmatprep.subr.mxu0 %v937_v11  ;;  %v663_v3 = vld [vmem:[#allocation10 + $0x258] sm:$0xff]  ;;  %v886_v48 = vld [vmem:[#allocation10 + $0x950] sm:$0xff] }
 0x173   :  { %1338 = vmatprep.subr.mxu1 %v699_v12  ;;  %1205 = vmatpush2.msra.mxu0 %v936_v13  ;;  %v659_v9 = vld [vmem:[#allocation10 + $0x238] sm:$0xff]  ;;  %v658_v12 = vld [vmem:[#allocation10 + $0x230] sm:$0xff] }
 0x174   :  { %1339 = vmatpush2.msra.mxu1 %v698_v14  ;;  %1206 = vmatprep.subr.mxu0 %v933_v16  ;;  %v771_v11 = vld [vmem:[#allocation10 + $0x5b8] sm:$0xff]  ;;  %v770_v13 = vld [vmem:[#allocation10 + $0x5b0] sm:$0xff] }
 0x175   :  { %1340 = vmatprep.subr.mxu1 %v695_v17  ;;  %1207 = vmatpush2.msra.mxu0 %v932_v24  ;;  %v655_v14 = vld [vmem:[#allocation10 + $0x218] sm:$0xff]  ;;  %v654_v16 = vld [vmem:[#allocation10 + $0x210] sm:$0xff] }
 0x176   :  { %1341 = vmatpush2.msra.mxu1 %v694_v19  ;;  %1208 = vmatprep.subr.mxu0 %v929_v20  ;;  %v766_v17 = vld [vmem:[#allocation10 + $0x590] sm:$0xff]  ;;  %v907_v24 = vld [vmem:[#allocation10 + $0x9f8] sm:$0xff] }
 0x177   :  { %1342 = vmatprep.subr.mxu1 %v691_v27  ;;  %1209 = vmatpush2.msra.mxu0 %v928_v28  ;;  %v906_v19 = vld [vmem:[#allocation10 + $0x9f0] sm:$0xff]  ;;  %v759_v20 = vld [vmem:[#allocation10 + $0x558] sm:$0xff] }
 0x178   :  { %1343 = vmatpush2.msra.mxu1 %v690_v30  ;;  %1210 = vmatprep.subr.mxu0 %v925_v34  ;;  %v903_v27 = vld [vmem:[#allocation10 + $0x9d8] sm:$0xff]  ;;  %v758_v28 = vld [vmem:[#allocation10 + $0x550] sm:$0xff] }
 0x179   :  { %1344 = vmatprep.subr.mxu1 %v687_v36  ;;  %1211 = vmatpush2.msra.mxu0 %v924_v37  ;;  %v902_v30 = vld [vmem:[#allocation10 + $0x9d0] sm:$0xff]  ;;  %v751_v36 = vld [vmem:[#allocation10 + $0x518] sm:$0xff] }
 0x17a   :  { %1345 = vmatpush2.msra.mxu1 %v686_v38  ;;  %1212 = vmatprep.subr.mxu0 %v921_v39  ;;  %v898_v34 = vld [vmem:[#allocation10 + $0x9b0] sm:$0xff]  ;;  %v747_v39 = vld [vmem:[#allocation10 + $0x4f8] sm:$0xff] }
 0x17b   :  { %1346 = vmatprep.subr.mxu1 %v683_v41  ;;  %1213 = vmatpush2.msra.mxu0 %v920_v43  ;;  %v750_v37 = vld [vmem:[#allocation10 + $0x510] sm:$0xff]  ;;  %v891_v41 = vld [vmem:[#allocation10 + $0x978] sm:$0xff] }
 0x17c   :  { %1347 = vmatpush2.msra.mxu1 %v682_v44  ;;  %1214 = vmatprep.subr.mxu0 %v917_v49  ;;  %v894_v38 = vld [vmem:[#allocation10 + $0x990] sm:$0xff]  ;;  %v743_v44 = vld [vmem:[#allocation10 + $0x4d8] sm:$0xff] }
 0x17d   :  { %1348 = vmatprep.subr.mxu1 %v679_v50  ;;  %1215 = vmatpush2.msra.mxu0 %v916_v51  ;;  %v890_v43 = vld [vmem:[#allocation10 + $0x970] sm:$0xff]  ;;  %v739_v49 = vld [vmem:[#allocation10 + $0x4b8] sm:$0xff] }
 0x17e   :  { %1349 = vmatpush2.msra.mxu1 %v678_v52  ;;  %1216 = vmatprep.subr.mxu0 %v913_v35  ;;  %v883_v50 = vld [vmem:[#allocation10 + $0x938] sm:$0xff]  ;;  %v738_v51 = vld [vmem:[#allocation10 + $0x4b0] sm:$0xff] }
 0x17f   :  { %1350 = vmatprep.subr.mxu1 %v675_v53  ;;  %1217 = vmatpush2.msra.mxu0 %v912_v55  ;;  %v882_v52 = vld [vmem:[#allocation10 + $0x930] sm:$0xff]  ;;  %v735_v35 = vld [vmem:[#allocation10 + $0x498] sm:$0xff] }
 0x180   :  { %1351 = vmatpush2.msra.mxu1 %v674_v57  ;;  %1218 = vmatprep.subr.mxu0 %v909_v59  ;;  %v879_v53 = vld [vmem:[#allocation10 + $0x918] sm:$0xff]  ;;  %v734_v54 = vld [vmem:[#allocation10 + $0x490] sm:$0xff] }
 0x181   :  { %1220 = vmatprep.mubr.f32.mxu0 %v2087_v46  ;;  %1352 = vmatprep.subr.mxu1 %v671_v60  ;;  %v878_v55 = vld [vmem:[#allocation10 + $0x910] sm:$0xff]  ;;  %v731_v57 = vld [vmem:[#allocation10 + $0x478] sm:$0xff] }
 0x182   :  { %1219 = vmatpush2.msra.mxu0 %v908_v61  ;;  %1353 = vmatpush2.msra.mxu1 %v670_v62  ;;  %v730_v58 = vld [vmem:[#allocation10 + $0x470] sm:$0xff]  ;;  %v727_v60 = vld [vmem:[#allocation10 + $0x458] sm:$0xff] }
 0x183   :  { %1221 = vmatmul.mubr.f32.vlgmr.msra.gmra.mxu0 %v2092_v63  ;;  %1354 = vmatprep.subr.mxu1 %v667_v1  ;;  %v874_v59 = vld [vmem:[#allocation10 + $0x8f0] sm:$0xff]  ;;  %v871_v61 = vld [vmem:[#allocation10 + $0x8d8] sm:$0xff] }
 0x184   :  { %1369 = vmatprep.subr.mxu0 %v779_v2  ;;  %1355 = vmatpush2.msra.mxu1 %v666_v40  ;;  %v726_v62 = vld [vmem:[#allocation10 + $0x450] sm:$0xff]  ;;  %v723_v2 = vld [vmem:[#allocation10 + $0x438] sm:$0xff] }
 0x185   :  { %1370 = vmatpush1.msra.mxu0 %v778_v56  ;;  %1433 = vmatprep.mubr.f32.mxu0 %v2054_v7  ;;  %v762_v7 = vld [vmem:[#allocation10 + $0x570] sm:$0xff]  ;;  %v867_v40 = vld [vmem:[#allocation10 + $0x8b8] sm:$0xff] }
 0x186   :  { %1356 = vmatprep.subr.mxu1 %v663_v3  ;;  %1371 = vmatprep.subr.mxu0 %v775_v4  ;;  %v870_v1 = vld [vmem:[#allocation10 + $0x8d0] sm:$0xff]  ;;  %v719_v4 = vld [vmem:[#allocation10 + $0x418] sm:$0xff] }
 0x187   :  { %1357 = vmatpush2.msra.mxu1 %v662_v5  ;;  %1372 = vmatpush1.msra.mxu0 %v774_v6  ;;  %v722_v56 = vld [vmem:[#allocation10 + $0x430] sm:$0xff]  ;;  %v863_v5 = vld [vmem:[#allocation10 + $0x898] sm:$0xff] }
 0x188   :  { %1358 = vmatprep.subr.mxu1 %v659_v9  ;;  %1373 = vmatprep.subr.mxu0 %v771_v11  ;;  %v866_v3 = vld [vmem:[#allocation10 + $0x8b0] sm:$0xff]  ;;  %v843_v11 = vld [vmem:[#allocation10 + $0x7f8] sm:$0xff] }
 0x189   :  { %1359 = vmatpush2.msra.mxu1 %v658_v12  ;;  %1374 = vmatpush1.msra.mxu0 %v770_v13  ;;  %v718_v6 = vld [vmem:[#allocation10 + $0x410] sm:$0xff]  ;;  %v859_v12 = vld [vmem:[#allocation10 + $0x878] sm:$0xff] }
 0x18a   :  { %1360 = vmatprep.subr.mxu1 %v655_v14  ;;  %1375 = vmatprep.subr.mxu0 %v767_v15  ;;  %v862_v9 = vld [vmem:[#allocation10 + $0x890] sm:$0xff]  ;;  %v839_v15 = vld [vmem:[#allocation10 + $0x7d8] sm:$0xff] }
 0x18b   :  { %1361 = vmatpush2.msra.mxu1 %v654_v16  ;;  %1376 = vmatpush1.msra.mxu0 %v766_v17  ;;  %v842_v13 = vld [vmem:[#allocation10 + $0x7f0] sm:$0xff]  ;;  %v855_v16 = vld [vmem:[#allocation10 + $0x858] sm:$0xff] }
 0x18c   :  { %1363 = vmatmul.mubr.f32.vlgmr.msra.gmra.mxu1 %v2056_v8  ;;  %1377 = vmatprep.subr.mxu0 %v763_v18  ;;  %v895_v8 = vld [vmem:[#allocation10 + $0x998] sm:$0xff]  ;;  %v858_v14 = vld [vmem:[#allocation10 + $0x870] sm:$0xff] }
 0x18d   :  { %1440 = vmatprep.subr.mxu1 %v907_v24  ;;  %1378 = vmatpush1.msra.mxu0 %v762_v7  ;;  %v838_v17 = vld [vmem:[#allocation10 + $0x7d0] sm:$0xff]  ;;  %v835_v24 = vld [vmem:[#allocation10 + $0x7b8] sm:$0xff] }
 0x18e   :  { %1441 = vmatpush1.msra.mxu1 %v906_v19  ;;  %1504 = vmatprep.mubr.f32.mxu1 %v2087_v46  ;;  %v875_v46 = vld [vmem:[#allocation10 + $0x8f8] sm:$0xff]  ;;  %v854_v18 = vld [vmem:[#allocation10 + $0x850] sm:$0xff] }
 0x18f   :  { %1379 = vmatprep.subr.mxu0 %v759_v20  ;;  %1442 = vmatprep.subr.mxu1 %v903_v27  ;;  %v851_v7 = vld [vmem:[#allocation10 + $0x838] sm:$0xff]  ;;  %v834_v19 = vld [vmem:[#allocation10 + $0x7b0] sm:$0xff] }
 0x190   :  { %1380 = vmatpush1.msra.mxu0 %v758_v28  ;;  %1443 = vmatpush1.msra.mxu1 %v902_v30  ;;  %v850_v20 = vld [vmem:[#allocation10 + $0x830] sm:$0xff]  ;;  %v831_v27 = vld [vmem:[#allocation10 + $0x798] sm:$0xff] }
 0x191   :  { %1381 = vmatprep.subr.mxu0 %v755_v31  ;;  %1444 = vmatprep.subr.mxu1 %v899_v29  ;;  %v847_v28 = vld [vmem:[#allocation10 + $0x818] sm:$0xff]  ;;  %v830_v30 = vld [vmem:[#allocation10 + $0x790] sm:$0xff] }
 0x192   :  { %1382 = vmatpush1.msra.mxu0 %v754_v33  ;;  %1445 = vmatpush1.msra.mxu1 %v898_v34  ;;  %v846_v31 = vld [vmem:[#allocation10 + $0x810] sm:$0xff]  ;;  %v827_v29 = vld [vmem:[#allocation10 + $0x778] sm:$0xff] }
 0x193   :  { %1383 = vmatprep.subr.mxu0 %v751_v36  ;;  %1446 = vmatprep.subr.mxu1 %v895_v8  ;;  %v971_v33 = vld [vmem:[#allocation10 + $0xbf8] sm:$0xff]  ;;  %v826_v34 = vld [vmem:[#allocation10 + $0x770] sm:$0xff] }
 0x194   :  { %1384 = vmatpush1.msra.mxu0 %v750_v37  ;;  %1447 = vmatpush1.msra.mxu1 %v894_v38  ;;  %v970_v36 = vld [vmem:[#allocation10 + $0xbf0] sm:$0xff]  ;;  %v823_v8 = vld [vmem:[#allocation10 + $0x758] sm:$0xff] }
 0x195   :  { %1385 = vmatprep.subr.mxu0 %v747_v39  ;;  %1448 = vmatprep.subr.mxu1 %v891_v41  ;;  %v967_v37 = vld [vmem:[#allocation10 + $0xbd8] sm:$0xff]  ;;  %v822_v38 = vld [vmem:[#allocation10 + $0x750] sm:$0xff] }
 0x196   :  { %1386 = vmatpush1.msra.mxu0 %v746_v42  ;;  %1449 = vmatpush1.msra.mxu1 %v890_v43  ;;  %v966_v39 = vld [vmem:[#allocation10 + $0xbd0] sm:$0xff]  ;;  %v819_v41 = vld [vmem:[#allocation10 + $0x738] sm:$0xff] }
 0x197   :  { %1387 = vmatprep.subr.mxu0 %v743_v44  ;;  %1450 = vmatprep.subr.mxu1 %v887_v45  ;;  %v963_v42 = vld [vmem:[#allocation10 + $0xbb8] sm:$0xff]  ;;  %v818_v43 = vld [vmem:[#allocation10 + $0x730] sm:$0xff] }
 0x198   :  { %1388 = vmatpush1.msra.mxu0 %v742_v47  ;;  %1451 = vmatpush1.msra.mxu1 %v886_v48  ;;  %v962_v44 = vld [vmem:[#allocation10 + $0xbb0] sm:$0xff]  ;;  %v815_v45 = vld [vmem:[#allocation10 + $0x718] sm:$0xff] }
 0x199   :  { %1389 = vmatprep.subr.mxu0 %v739_v49  ;;  %1452 = vmatprep.subr.mxu1 %v883_v50  ;;  %v959_v47 = vld [vmem:[#allocation10 + $0xb98] sm:$0xff]  ;;  %v814_v48 = vld [vmem:[#allocation10 + $0x710] sm:$0xff] }
 0x19a   :  { %1390 = vmatpush1.msra.mxu0 %v738_v51  ;;  %1453 = vmatpush1.msra.mxu1 %v882_v52  ;;  %v958_v49 = vld [vmem:[#allocation10 + $0xb90] sm:$0xff]  ;;  %v811_v50 = vld [vmem:[#allocation10 + $0x6f8] sm:$0xff] }
 0x19b   :  { %1391 = vmatprep.subr.mxu0 %v735_v35  ;;  %1454 = vmatprep.subr.mxu1 %v879_v53  ;;  %v955_v51 = vld [vmem:[#allocation10 + $0xb78] sm:$0xff]  ;;  %v810_v52 = vld [vmem:[#allocation10 + $0x6f0] sm:$0xff] }
 0x19c   :  { %1392 = vmatpush1.msra.mxu0 %v734_v54  ;;  %1455 = vmatpush1.msra.mxu1 %v878_v55  ;;  %v954_v35 = vld [vmem:[#allocation10 + $0xb70] sm:$0xff]  ;;  %v807_v53 = vld [vmem:[#allocation10 + $0x6d8] sm:$0xff] }
 0x19d   :  { %1393 = vmatprep.subr.mxu0 %v731_v57  ;;  %1456 = vmatprep.subr.mxu1 %v875_v46  ;;  %v951_v54 = vld [vmem:[#allocation10 + $0xb58] sm:$0xff]  ;;  %v806_v55 = vld [vmem:[#allocation10 + $0x6d0] sm:$0xff] }
 0x19e   :  { %1394 = vmatpush1.msra.mxu0 %v730_v58  ;;  %1457 = vmatpush1.msra.mxu1 %v874_v59  ;;  %v950_v57 = vld [vmem:[#allocation10 + $0xb50] sm:$0xff]  ;;  %v803_v46 = vld [vmem:[#allocation10 + $0x6b8] sm:$0xff] }
 0x19f   :  { %1395 = vmatprep.subr.mxu0 %v727_v60  ;;  %1458 = vmatprep.subr.mxu1 %v871_v61  ;;  %v947_v58 = vld [vmem:[#allocation10 + $0xb38] sm:$0xff]  ;;  %v802_v59 = vld [vmem:[#allocation10 + $0x6b0] sm:$0xff] }
 0x1a0   :  { %1396 = vmatpush1.msra.mxu0 %v726_v62  ;;  %1459 = vmatpush1.msra.mxu1 %v870_v1  ;;  %v946_v60 = vld [vmem:[#allocation10 + $0xb30] sm:$0xff]  ;;  %v799_v61 = vld [vmem:[#allocation10 + $0x698] sm:$0xff] }
 0x1a1   :  { %1397 = vmatprep.subr.mxu0 %v723_v2  ;;  %1460 = vmatprep.subr.mxu1 %v867_v40  ;;  %v943_v62 = vld [vmem:[#allocation10 + $0xb18] sm:$0xff]  ;;  %v798_v1 = vld [vmem:[#allocation10 + $0x690] sm:$0xff] }
 0x1a2   :  { %1398 = vmatpush1.msra.mxu0 %v722_v56  ;;  %1461 = vmatpush1.msra.mxu1 %v866_v3  ;;  %v942_v2 = vld [vmem:[#allocation10 + $0xb10] sm:$0xff]  ;;  %v795_v40 = vld [vmem:[#allocation10 + $0x678] sm:$0xff] }
 0x1a3   :  { %1399 = vmatprep.subr.mxu0 %v719_v4  ;;  %1462 = vmatprep.subr.mxu1 %v863_v5  ;;  %v939_v56 = vld [vmem:[#allocation10 + $0xaf8] sm:$0xff]  ;;  %v794_v3 = vld [vmem:[#allocation10 + $0x670] sm:$0xff] }
 0x1a4   :  { %1400 = vmatpush1.msra.mxu0 %v718_v6  ;;  %1463 = vmatpush1.msra.mxu1 %v862_v9  ;;  %v938_v4 = vld [vmem:[#allocation10 + $0xaf0] sm:$0xff]  ;;  %v791_v5 = vld [vmem:[#allocation10 + $0x658] sm:$0xff] }
 0x1a5   :  { %1401 = vmatprep.subr.mxu0 %v843_v11  ;;  %1464 = vmatprep.subr.mxu1 %v859_v12  ;;  %v935_v6 = vld [vmem:[#allocation10 + $0xad8] sm:$0xff]  ;;  %v790_v9 = vld [vmem:[#allocation10 + $0x650] sm:$0xff] }
 0x1a6   :  { %1402 = vmatpush2.msra.mxu0 %v842_v13  ;;  %1465 = vmatpush1.msra.mxu1 %v858_v14  ;;  %v934_v11 = vld [vmem:[#allocation10 + $0xad0] sm:$0xff]  ;;  %v787_v12 = vld [vmem:[#allocation10 + $0x638] sm:$0xff] }
 0x1a7   :  { %1403 = vmatprep.subr.mxu0 %v839_v15  ;;  %1466 = vmatprep.subr.mxu1 %v855_v16  ;;  %v931_v13 = vld [vmem:[#allocation10 + $0xab8] sm:$0xff]  ;;  %v786_v14 = vld [vmem:[#allocation10 + $0x630] sm:$0xff] }
 0x1a8   :  { %1404 = vmatpush2.msra.mxu0 %v838_v17  ;;  %1467 = vmatpush1.msra.mxu1 %v854_v18  ;;  %v930_v15 = vld [vmem:[#allocation10 + $0xab0] sm:$0xff]  ;;  %v783_v16 = vld [vmem:[#allocation10 + $0x618] sm:$0xff] }
 0x1a9   :  { %1405 = vmatprep.subr.mxu0 %v835_v24  ;;  %1468 = vmatprep.subr.mxu1 %v851_v7  ;;  %v927_v17 = vld [vmem:[#allocation10 + $0xa98] sm:$0xff]  ;;  %v782_v18 = vld [vmem:[#allocation10 + $0x610] sm:$0xff] }
 0x1aa   :  { %1406 = vmatpush2.msra.mxu0 %v834_v19  ;;  %1469 = vmatpush1.msra.mxu1 %v850_v20  ;;  %v926_v24 = vld [vmem:[#allocation10 + $0xa90] sm:$0xff]  ;;  %v923_v7 = vld [vmem:[#allocation10 + $0xa78] sm:$0xff] }
 0x1ab   :  { %1407 = vmatprep.subr.mxu0 %v831_v27  ;;  %1470 = vmatprep.subr.mxu1 %v847_v28  ;;  %v987_v19 = vld [vmem:[#allocation10 + $0xc78] sm:$0xff]  ;;  %v922_v20 = vld [vmem:[#allocation10 + $0xa70] sm:$0xff] }
 0x1ac   :  { %1408 = vmatpush2.msra.mxu0 %v830_v30  ;;  %1471 = vmatpush1.msra.mxu1 %v846_v31  ;;  %v986_v27 = vld [vmem:[#allocation10 + $0xc70] sm:$0xff]  ;;  %v919_v28 = vld [vmem:[#allocation10 + $0xa58] sm:$0xff] }
 0x1ad   :  { %1409 = vmatprep.subr.mxu0 %v827_v29  ;;  %1472 = vmatprep.subr.mxu1 %v971_v33  ;;  %v983_v30 = vld [vmem:[#allocation10 + $0xc58] sm:$0xff]  ;;  %v918_v31 = vld [vmem:[#allocation10 + $0xa50] sm:$0xff] }
 0x1ae   :  { %1410 = vmatpush2.msra.mxu0 %v826_v34  ;;  %1473 = vmatpush2.msra.mxu1 %v970_v36  ;;  %v982_v29 = vld [vmem:[#allocation10 + $0xc50] sm:$0xff]  ;;  %v915_v33 = vld [vmem:[#allocation10 + $0xa38] sm:$0xff] }
 0x1af   :  { %1411 = vmatprep.subr.mxu0 %v823_v8  ;;  %1474 = vmatprep.subr.mxu1 %v967_v37  ;;  %v979_v34 = vld [vmem:[#allocation10 + $0xc38] sm:$0xff]  ;;  %v914_v36 = vld [vmem:[#allocation10 + $0xa30] sm:$0xff] }
 0x1b0   :  { %1412 = vmatpush2.msra.mxu0 %v822_v38  ;;  %1475 = vmatpush2.msra.mxu1 %v966_v39  ;;  %v978_v8 = vld [vmem:[#allocation10 + $0xc30] sm:$0xff]  ;;  %v911_v37 = vld [vmem:[#allocation10 + $0xa18] sm:$0xff] }
 0x1b1   :  { %1413 = vmatprep.subr.mxu0 %v819_v41  ;;  %1476 = vmatprep.subr.mxu1 %v963_v42  ;;  %v975_v38 = vld [vmem:[#allocation10 + $0xc18] sm:$0xff]  ;;  %v974_v39 = vld [vmem:[#allocation10 + $0xc10] sm:$0xff]  ;;  %v988_v42 = vld [vmem:[#allocation12] sm:$0xf] }
 0x1b2   :  { %1414 = vmatpush2.msra.mxu0 %v818_v43  ;;  %1477 = vmatpush2.msra.mxu1 %v962_v44  ;;  %v997_v43 = vrot.slane %v988_v42, %v2014_v25 }
 0x1b3   :  { %1415 = vmatprep.subr.mxu0 %v815_v45  ;;  %1478 = vmatprep.subr.mxu1 %v959_v47  ;;  %v993_v47 = vrot.slane %v988_v42, %v2006_v22 }
 0x1b4   :  { %1416 = vmatpush2.msra.mxu0 %v814_v48  ;;  %1479 = vmatpush2.msra.mxu1 %v958_v49 }
 0x1b5   :  { %1417 = vmatprep.subr.mxu0 %v811_v50  ;;  %1480 = vmatprep.subr.mxu1 %v955_v51 }
 0x1b6   :  { %1418 = vmatpush2.msra.mxu0 %v810_v52  ;;  %1481 = vmatpush2.msra.mxu1 %v954_v35 }
 0x1b7   :  { %1419 = vmatprep.subr.mxu0 %v807_v53  ;;  %1482 = vmatprep.subr.mxu1 %v951_v54 }
 0x1b8   :  { %1420 = vmatpush2.msra.mxu0 %v806_v55  ;;  %1483 = vmatpush2.msra.mxu1 %v950_v57 }
 0x1b9   :  { %1421 = vmatprep.subr.mxu0 %v803_v46  ;;  %1484 = vmatprep.subr.mxu1 %v947_v58  ;;  %v1001_v46 = vrot.slane %v988_v42, %v2009_v23 }
 0x1ba   :  { %1422 = vmatpush2.msra.mxu0 %v802_v59  ;;  %1485 = vmatpush2.msra.mxu1 %v946_v60  ;;  %v1005_v60 = vrot.slane %v988_v42, %v2017_v26 }
 0x1bb   :  { %1423 = vmatprep.subr.mxu0 %v799_v61  ;;  %1486 = vmatprep.subr.mxu1 %v943_v62 }
 0x1bc   :  { %1424 = vmatpush2.msra.mxu0 %v798_v1  ;;  %1487 = vmatpush2.msra.mxu1 %v942_v2 }
 0x1bd   :  { %1425 = vmatprep.subr.mxu0 %v795_v40  ;;  %1488 = vmatprep.subr.mxu1 %v939_v56  ;;  %v1594_v56 = vld [vmem:[#allocation13] sm:$0xf] }
 0x1be   :  { %1426 = vmatpush2.msra.mxu0 %v794_v3  ;;  %1489 = vmatpush2.msra.mxu1 %v938_v4 }
 0x1bf   :  { %1427 = vmatprep.subr.mxu0 %v791_v5  ;;  %1490 = vmatprep.subr.mxu1 %v935_v6  ;;  %v1603_v5 = vrot.slane %v1594_v56, %v2014_v25 }
 0x1c0   :  { %1428 = vmatpush2.msra.mxu0 %v790_v9  ;;  %1491 = vmatpush2.msra.mxu1 %v934_v11 }
 0x1c1   :  { %1429 = vmatprep.subr.mxu0 %v787_v12  ;;  %1492 = vmatprep.subr.mxu1 %v931_v13 }
 0x1c2   :  { %1430 = vmatpush2.msra.mxu0 %v786_v14  ;;  %1493 = vmatpush2.msra.mxu1 %v930_v15  ;;  %v1599_v14 = vrot.slane %v1594_v56, %v2006_v22 }
 0x1c3   :  { %1431 = vmatprep.subr.mxu0 %v783_v16  ;;  %1494 = vmatprep.subr.mxu1 %v927_v17  ;;  %v1620_v17 = vld [vmem:[#allocation15] sm:$0xf] }
 0x1c4   :  { %1432 = vmatpush2.msra.mxu0 %v782_v18  ;;  %1495 = vmatpush2.msra.mxu1 %v926_v24  ;;  %v1915_v18 = vmov 1983009808  }
 0x1c5   :  { %1434 = vmatmul.mubr.f32.vlgmr.msra.gmra.mxu0 %v2058_v10  ;;  %1496 = vmatprep.subr.mxu1 %v923_v7  ;;  %v910_v10 = vld [vmem:[#allocation10 + $0xa10] sm:$0xff]  ;;  %v1653_v24 = vunpack.c.l.s4 %v1915_v18 }
 0x1c6   :  { %1535 = vmatprep.subr.mxu0 %v987_v19  ;;  %1497 = vmatpush2.msra.mxu1 %v922_v20 }
 0x1c7   :  { %1536 = vmatpush1.msra.mxu0 %v986_v27  ;;  %1498 = vmatprep.subr.mxu1 %v919_v28  ;;  %v1629_v27 = vrot.slane %v1620_v17, %v2014_v25  ;;  %v1607_v28 = vrot.slane %v1594_v56, %v2009_v23  ;;  %v1637_v25 = vrot.slane %v1620_v17, %v2017_v26 }
 0x1c8   :  { %1537 = vmatprep.subr.mxu0 %v983_v30  ;;  %1499 = vmatpush2.msra.mxu1 %v918_v31 }
 0x1c9   :  { %1538 = vmatpush1.msra.mxu0 %v982_v29  ;;  %1500 = vmatprep.subr.mxu1 %v915_v33 }
 0x1ca   :  { %1539 = vmatprep.subr.mxu0 %v979_v34  ;;  %1501 = vmatpush2.msra.mxu1 %v914_v36  ;;  %v1625_v34 = vrot.slane %v1620_v17, %v2006_v22  ;;  %v1611_v36 = vrot.slane %v1594_v56, %v2017_v26 }
 0x1cb   :  { %1540 = vmatpush1.msra.mxu0 %v978_v8  ;;  %1502 = vmatprep.subr.mxu1 %v911_v37  ;;  %v1654_v8 = vunpack.c.0.s8 %v1653_v24 }
 0x1cc   :  { %1541 = vmatprep.subr.mxu0 %v975_v38  ;;  %1503 = vmatpush2.msra.mxu1 %v910_v10 }
 0x1cd   :  { %1542 = vmatpush1.msra.mxu0 %v974_v39  ;;  %1575 = vmatprep.mubr.f32.mxu0 %v1913_v0 }
 0x1ce   :  { %1505 = vmatmul.mubr.f32.vlgmr.msra.gmra.mxu1 %v2092_v63  ;;  %1683 = vmatmul.mubr.msk.f32.vlgmr.msra.gmra.mxu0 %vm1010_vm7, %v2065_v32 }
 0x201   :  { %v1080_v41 = vpop.f32.mrf.mxu0  ;;  %v1151_v44 = vpop.f32.mrf.mxu1 }
 0x202   :  { %v1081_v51 = vadd.f32 %v1080_v41, %v993_v47  ;;  %v1633_v41 = vrot.slane %v1620_v17, %v2009_v23  ;;  %v1657_v47 = vsub.s32 %v1654_v8, %v2003_v21 }
 0x203   :  { %v1082_v45 = vpop.f32.mrf.mxu0  ;;  %v1153_v50 = vpop.f32.mrf.mxu1 }
 0x204   :  { %v1083_v49 = vadd.f32 %v1082_v45, %v997_v43  ;;  %v1152_v53 = vadd.f32 %v1151_v44, %v1081_v51 }
 0x206   :  { %v1154_v0 = vadd.f32 %v1153_v50, %v1083_v49 }
 0x20a   :  { %v1293_v52 = vpop.f32.mrf.mxu1 }
 0x20c   :  { %v1295_v54 = vpop.f32.mrf.mxu1 }
 0x243   :  { %v1222_v48 = vpop.f32.mrf.mxu0 }
 0x244   :  { %v1223_v55 = vadd.f32 %v1222_v48, %v1152_v53 }
 0x245   :  { %v1224_v35 = vpop.f32.mrf.mxu0 }
 0x246   :  { %v1225_v63 = vadd.f32 %v1224_v35, %v1154_v0  ;;  %v1294_v59 = vadd.f32 %v1293_v52, %v1223_v55 }
 0x248   :  { %v1296_v57 = vadd.f32 %v1295_v54, %v1225_v63  ;;  %v1586_v40 = vmul.f32 0.01, %v1294_v59  ;;  %vm1582_vm11 = vcmp.ge.f32.partialorder %v1294_v59, 0.0 }
 0x24a   :  { %v1587_v62 = vmul.f32 0.01, %v1296_v57  ;;  %vm1583_vm10 = vcmp.ge.f32.partialorder %v1296_v57, 0.0  ;;  %v1590_v16 = vsel %vm1582_vm11, %v1294_v59, %v1586_v40 }
 0x24b   :  { %v1616_v33 = vmul.f32 %v1599_v14, %v1590_v16 }
 0x24c   :  { %v1364_v32 = vpop.f32.mrf.mxu1  ;;  %v1591_v9 = vsel %vm1583_vm10, %v1296_v57, %v1587_v62 }
 0x24d   :  { %v1365_v1 = vadd.f32 %v1364_v32, %v1001_v46  ;;  %v1617_v20 = vmul.f32 %v1603_v5, %v1591_v9  ;;  %v1642_v43 = vadd.f32 %v1625_v34, %v1616_v33 }
 0x24e   :  { %v1366_v61 = vpop.f32.mrf.mxu1 }
 0x24f   :  { %v1367_v3 = vadd.f32 %v1366_v61, %v1005_v60  ;;  %v1643_v10 = vadd.f32 %v1629_v27, %v1617_v20 }
 0x251   :  { %v1650_v45 = vcombine.low %v1642_v43, %v1643_v10 }
 0x253   :  { %v1658_v50 = vrot.slane %v1650_v45, %v1657_v47 }
 0x285   :  { %v1435_v58 = vpop.f32.mrf.mxu0 }
 0x286   :  { %v1436_v4 = vadd.f32 %v1435_v58, %v1365_v1 }
 0x287   :  { %v1437_v2 = vpop.f32.mrf.mxu0 }
 0x288   :  { %v1438_v11 = vadd.f32 %v1437_v2, %v1367_v3 }
 0x28e   :  { %v1506_v6 = vpop.f32.mrf.mxu1  ;;  %v1577_v13 = vpop.f32.mrf.mxu0 }
 0x28f   :  { %v1507_v12 = vadd.f32 %v1506_v6, %v1436_v4 }
 0x290   :  { %v1508_v15 = vpop.f32.mrf.mxu1  ;;  %v1579_v30 = vpop.f32.mrf.mxu0 }
 0x291   :  { %v1578_v7 = vadd.f32 %v1577_v13, %v1507_v12  ;;  %v1509_v19 = vadd.f32 %v1508_v15, %v1438_v11 }
 0x293   :  { %vm1584_vm12 = vcmp.ge.f32.partialorder %v1578_v7, 0.0  ;;  %v1588_v31 = vmul.f32 0.01, %v1578_v7  ;;  %v1580_v29 = vadd.f32 %v1579_v30, %v1509_v19 }
 0x295   :  { %v1592_v37 = vsel %vm1584_vm12, %v1578_v7, %v1588_v31  ;;  %vm1585_vm13 = vcmp.ge.f32.partialorder %v1580_v29, 0.0  ;;  %v1589_v38 = vmul.f32 0.01, %v1580_v29 }
 0x296   :  { %v1618_v39 = vmul.f32 %v1607_v28, %v1592_v37 }
 0x297   :  { %v1593_v42 = vsel %vm1585_vm13, %v1580_v29, %v1589_v38 }
 0x298   :  { %v1619_v44 = vmul.f32 %v1611_v36, %v1593_v42  ;;  %v1644_v48 = vadd.f32 %v1633_v41, %v1618_v39 }
 0x29a   :  { %v1645_v22 = vadd.f32 %v1637_v25, %v1619_v44 }
 0x29c   :  { %v1651_v49 = vcombine.low %v1644_v48, %v1645_v22 }
 0x29e   :  { %v1665_v51 = vrot.slane %v1651_v49, %v1657_v47 }
 0x2a0   :  { %v1666_v52 = vcombine.low %v1658_v50, %v1665_v51 }
 0x2a2   :  { %1668 = vst [vmem:[%s2128_s9] sm:$0xff] %v1666_v52 }
 0x2a3   :  { %1673 = vsyncpa [#allocation3], 1 }
 0x2a4   :  { %1674 = vsyncpa [#allocation5], 1 }
 0x2a5   :  { %1675 = vsyncpa [#allocation8], 1 }
 0x2a6   :  { %1676 = vsyncpa [#allocation11], 1 }
 0x2a7   :  { %1677 = vsyncpa [#allocation14], 1 }

// kernel: decoder_forward.5
= control target key start
LH: loop header
LB: loop body
LE: loop exit
PB: predicated region body
PF: predicated region fallthrough
CT: control target
= control target key end

     0   :  { %v416_v3 = vmov 0.0   ;;  %vm377_vm0 = vcmask 1043456   ;;  %vm378_vm1 = vcmask 64516   ;;  %s748_s1 = inlined_call_operand.vmem [shape: f32[128,648], index: 1, kind: input, shape index: {}]   ;;  %s749_s0 = inlined_call_operand.vmem [shape: f32[4,128], index: 0, kind: input, shape index: {}]   ;;  %s750_s2 = inlined_call_operand.<no memory space> [shape: f32[1], index: 2, kind: input, shape index: {}]   ;;  %s751_s3 = inlined_call_operand.vmem [shape: f32[4,648], index: 3, kind: output, shape index: {}]  }
   0x1   :  { %v107_v0 = vld [vmem:[%s748_s1 + $0x2d8] sm:$0xff]  ;;  %v106_v1 = vld [vmem:[%s748_s1 + $0x2d0] sm:$0xff]  ;;  %v101_v2 = vld [vmem:[%s748_s1 + $0x2a8] sm:$0xff]  ;;  %178 = vmatprep.mubr.f32.mxu0 %v416_v3  ;;  %249 = vmatprep.mubr.f32.mxu1 %v416_v3 }
   0x2   :  { %114 = vmatprep.subr.mxu0 %v107_v0  ;;  %v100_v4 = vld [vmem:[%s748_s1 + $0x2a0] sm:$0xff]  ;;  %v95_v5 = vld [vmem:[%s748_s1 + $0x278] sm:$0xff]  ;;  %v94_v6 = vld [vmem:[%s748_s1 + $0x270] sm:$0xff] }
   0x3   :  { %115 = vmatpush1.msra.mxu0 %v106_v1  ;;  %v89_v7 = vld [vmem:[%s748_s1 + $0x248] sm:$0xff]  ;;  %v88_v8 = vld [vmem:[%s748_s1 + $0x240] sm:$0xff]  ;;  %v83_v9 = vld [vmem:[%s748_s1 + $0x218] sm:$0xff] }
   0x4   :  { %116 = vmatprep.subr.mxu0 %v101_v2  ;;  %v82_v10 = vld [vmem:[%s748_s1 + $0x210] sm:$0xff]  ;;  %v77_v11 = vld [vmem:[%s748_s1 + $0x1e8] sm:$0xff]  ;;  %v76_v12 = vld [vmem:[%s748_s1 + $0x1e0] sm:$0xff] }
   0x5   :  { %117 = vmatpush1.msra.mxu0 %v100_v4  ;;  %v71_v13 = vld [vmem:[%s748_s1 + $0x1b8] sm:$0xff]  ;;  %v109_v14 = vld [vmem:[%s748_s1 + $0x2e8] sm:$0xff]  ;;  %v70_v15 = vld [vmem:[%s748_s1 + $0x1b0] sm:$0xff] }
   0x6   :  { %118 = vmatprep.subr.mxu0 %v95_v5  ;;  %185 = vmatprep.subr.mxu1 %v109_v14  ;;  %v108_v16 = vld [vmem:[%s748_s1 + $0x2e0] sm:$0xff]  ;;  %v103_v17 = vld [vmem:[%s748_s1 + $0x2b8] sm:$0xff]  ;;  %v65_v18 = vld [vmem:[%s748_s1 + $0x188] sm:$0xff] }
   0x7   :  { %119 = vmatpush1.msra.mxu0 %v94_v6  ;;  %186 = vmatpush1.msra.mxu1 %v108_v16  ;;  %v102_v19 = vld [vmem:[%s748_s1 + $0x2b0] sm:$0xff]  ;;  %v64_v20 = vld [vmem:[%s748_s1 + $0x180] sm:$0xff]  ;;  %v97_v21 = vld [vmem:[%s748_s1 + $0x288] sm:$0xff] }
   0x8   :  { %120 = vmatprep.subr.mxu0 %v89_v7  ;;  %187 = vmatprep.subr.mxu1 %v103_v17  ;;  %v96_v22 = vld [vmem:[%s748_s1 + $0x280] sm:$0xff]  ;;  %v59_v23 = vld [vmem:[%s748_s1 + $0x158] sm:$0xff]  ;;  %v58_v25 = vld [vmem:[%s748_s1 + $0x150] sm:$0xff] }
   0x9   :  { %121 = vmatpush1.msra.mxu0 %v88_v8  ;;  %188 = vmatpush1.msra.mxu1 %v102_v19  ;;  %v91_v24 = vld [vmem:[%s748_s1 + $0x258] sm:$0xff]  ;;  %v90_v26 = vld [vmem:[%s748_s1 + $0x250] sm:$0xff]  ;;  %v53_v27 = vld [vmem:[%s748_s1 + $0x128] sm:$0xff] }
   0xa   :  { %122 = vmatprep.subr.mxu0 %v83_v9  ;;  %189 = vmatprep.subr.mxu1 %v97_v21  ;;  %v85_v28 = vld [vmem:[%s748_s1 + $0x228] sm:$0xff]  ;;  %v52_v29 = vld [vmem:[%s748_s1 + $0x120] sm:$0xff]  ;;  %v47_v31 = vld [vmem:[%s748_s1 + $0xf8] sm:$0xff] }
   0xb   :  { %123 = vmatpush1.msra.mxu0 %v82_v10  ;;  %190 = vmatpush1.msra.mxu1 %v96_v22  ;;  %v84_v30 = vld [vmem:[%s748_s1 + $0x220] sm:$0xff]  ;;  %v79_v32 = vld [vmem:[%s748_s1 + $0x1f8] sm:$0xff]  ;;  %v46_v33 = vld [vmem:[%s748_s1 + $0xf0] sm:$0xff] }
   0xc   :  { %124 = vmatprep.subr.mxu0 %v77_v11  ;;  %191 = vmatprep.subr.mxu1 %v91_v24  ;;  %v78_v34 = vld [vmem:[%s748_s1 + $0x1f0] sm:$0xff]  ;;  %v41_v35 = vld [vmem:[%s748_s1 + $0xc8] sm:$0xff]  ;;  %v40_v37 = vld [vmem:[%s748_s1 + $0xc0] sm:$0xff] }
   0xd   :  { %125 = vmatpush1.msra.mxu0 %v76_v12  ;;  %192 = vmatpush1.msra.mxu1 %v90_v26  ;;  %v73_v36 = vld [vmem:[%s748_s1 + $0x1c8] sm:$0xff]  ;;  %v72_v38 = vld [vmem:[%s748_s1 + $0x1c0] sm:$0xff]  ;;  %v35_v39 = vld [vmem:[%s748_s1 + $0x98] sm:$0xff] }
   0xe   :  { %126 = vmatprep.subr.mxu0 %v71_v13  ;;  %193 = vmatprep.subr.mxu1 %v85_v28  ;;  %v67_v40 = vld [vmem:[%s748_s1 + $0x198] sm:$0xff]  ;;  %v34_v41 = vld [vmem:[%s748_s1 + $0x90] sm:$0xff]  ;;  %v29_v43 = vld [vmem:[%s748_s1 + $0x68] sm:$0xff] }
   0xf   :  { %127 = vmatpush1.msra.mxu0 %v70_v15  ;;  %194 = vmatpush1.msra.mxu1 %v84_v30  ;;  %v66_v42 = vld [vmem:[%s748_s1 + $0x190] sm:$0xff]  ;;  %v61_v44 = vld [vmem:[%s748_s1 + $0x168] sm:$0xff]  ;;  %v28_v45 = vld [vmem:[%s748_s1 + $0x60] sm:$0xff] }
  0x10   :  { %128 = vmatprep.subr.mxu0 %v65_v18  ;;  %195 = vmatprep.subr.mxu1 %v79_v32  ;;  %v60_v46 = vld [vmem:[%s748_s1 + $0x160] sm:$0xff]  ;;  %v23_v47 = vld [vmem:[%s748_s1 + $0x38] sm:$0xff]  ;;  %v22_v49 = vld [vmem:[%s748_s1 + $0x30] sm:$0xff] }
  0x11   :  { %129 = vmatpush1.msra.mxu0 %v64_v20  ;;  %196 = vmatpush1.msra.mxu1 %v78_v34  ;;  %v55_v48 = vld [vmem:[%s748_s1 + $0x138] sm:$0xff]  ;;  %v54_v50 = vld [vmem:[%s748_s1 + $0x130] sm:$0xff]  ;;  %v17_v51 = vld [vmem:[%s748_s1 + $0x8] sm:$0xff]  ;;  %v113_v34 = vstv %s750_s2 }
  0x12   :  { %130 = vmatprep.subr.mxu0 %v59_v23  ;;  %197 = vmatprep.subr.mxu1 %v73_v36  ;;  %v49_v52 = vld [vmem:[%s748_s1 + $0x108] sm:$0xff]  ;;  %v16_v53 = vld [vmem:[%s748_s1] sm:$0xff]  ;;  %v111_v56 = vld [vmem:[%s748_s1 + $0x2f8] sm:$0xff] }
  0x13   :  { %131 = vmatpush1.msra.mxu0 %v58_v25  ;;  %198 = vmatpush1.msra.mxu1 %v72_v38  ;;  %v48_v54 = vld [vmem:[%s748_s1 + $0x100] sm:$0xff]  ;;  %v110_v57 = vld [vmem:[%s748_s1 + $0x2f0] sm:$0xff]  ;;  %v43_v58 = vld [vmem:[%s748_s1 + $0xd8] sm:$0xff] }
  0x14   :  { %132 = vmatprep.subr.mxu0 %v53_v27  ;;  %199 = vmatprep.subr.mxu1 %v67_v40  ;;  %v604_v55 = vld [vmem:[%s749_s0] sm:$0xf]  ;;  %v105_v59 = vld [vmem:[%s748_s1 + $0x2c8] sm:$0xff]  ;;  %v42_v60 = vld [vmem:[%s748_s1 + $0xd0] sm:$0xff] }
  0x15   :  { %133 = vmatpush1.msra.mxu0 %v52_v29  ;;  %200 = vmatpush1.msra.mxu1 %v66_v42  ;;  %v104_v61 = vld [vmem:[%s748_s1 + $0x2c0] sm:$0xff]  ;;  %v37_v62 = vld [vmem:[%s748_s1 + $0xa8] sm:$0xff]  ;;  %v99_v63 = vld [vmem:[%s748_s1 + $0x298] sm:$0xff] }
  0x16   :  { %134 = vmatprep.subr.mxu0 %v47_v31  ;;  %201 = vmatprep.subr.mxu1 %v61_v44  ;;  %v36_v0 = vld [vmem:[%s748_s1 + $0xa0] sm:$0xff]  ;;  %v98_v1 = vld [vmem:[%s748_s1 + $0x290] sm:$0xff]  ;;  %v31_v2 = vld [vmem:[%s748_s1 + $0x78] sm:$0xff] }
  0x17   :  { %135 = vmatpush1.msra.mxu0 %v46_v33  ;;  %202 = vmatpush1.msra.mxu1 %v60_v46  ;;  %v93_v4 = vld [vmem:[%s748_s1 + $0x268] sm:$0xff]  ;;  %v30_v5 = vld [vmem:[%s748_s1 + $0x70] sm:$0xff]  ;;  %v92_v6 = vld [vmem:[%s748_s1 + $0x260] sm:$0xff] }
  0x18   :  { %136 = vmatprep.subr.mxu0 %v41_v35  ;;  %203 = vmatprep.subr.mxu1 %v55_v48  ;;  %v25_v7 = vld [vmem:[%s748_s1 + $0x48] sm:$0xff]  ;;  %v87_v8 = vld [vmem:[%s748_s1 + $0x238] sm:$0xff]  ;;  %v24_v9 = vld [vmem:[%s748_s1 + $0x40] sm:$0xff] }
  0x19   :  { %137 = vmatpush1.msra.mxu0 %v40_v37  ;;  %204 = vmatpush1.msra.mxu1 %v54_v50  ;;  %v86_v10 = vld [vmem:[%s748_s1 + $0x230] sm:$0xff]  ;;  %v19_v11 = vld [vmem:[%s748_s1 + $0x18] sm:$0xff]  ;;  %v81_v12 = vld [vmem:[%s748_s1 + $0x208] sm:$0xff] }
  0x1a   :  { %138 = vmatprep.subr.mxu0 %v35_v39  ;;  %205 = vmatprep.subr.mxu1 %v49_v52  ;;  %v18_v13 = vld [vmem:[%s748_s1 + $0x10] sm:$0xff]  ;;  %v80_v14 = vld [vmem:[%s748_s1 + $0x200] sm:$0xff]  ;;  %v75_v15 = vld [vmem:[%s748_s1 + $0x1d8] sm:$0xff] }
  0x1b   :  { %139 = vmatpush1.msra.mxu0 %v34_v41  ;;  %206 = vmatpush1.msra.mxu1 %v48_v54  ;;  %v74_v16 = vld [vmem:[%s748_s1 + $0x1d0] sm:$0xff]  ;;  %v69_v17 = vld [vmem:[%s748_s1 + $0x1a8] sm:$0xff]  ;;  %v68_v18 = vld [vmem:[%s748_s1 + $0x1a0] sm:$0xff] }
  0x1c   :  { %140 = vmatprep.subr.mxu0 %v29_v43  ;;  %207 = vmatprep.subr.mxu1 %v43_v58  ;;  %v63_v19 = vld [vmem:[%s748_s1 + $0x178] sm:$0xff]  ;;  %v62_v20 = vld [vmem:[%s748_s1 + $0x170] sm:$0xff]  ;;  %v57_v21 = vld [vmem:[%s748_s1 + $0x148] sm:$0xff] }
  0x1d   :  { %141 = vmatpush1.msra.mxu0 %v28_v45  ;;  %208 = vmatpush1.msra.mxu1 %v42_v60  ;;  %v51_v22 = vld [vmem:[%s748_s1 + $0x118] sm:$0xff]  ;;  %v50_v23 = vld [vmem:[%s748_s1 + $0x110] sm:$0xff]  ;;  %v45_v24 = vld [vmem:[%s748_s1 + $0xe8] sm:$0xff] }
  0x1e   :  { %142 = vmatprep.subr.mxu0 %v23_v47  ;;  %209 = vmatprep.subr.mxu1 %v37_v62  ;;  %v44_v25 = vld [vmem:[%s748_s1 + $0xe0] sm:$0xff]  ;;  %v39_v26 = vld [vmem:[%s748_s1 + $0xb8] sm:$0xff]  ;;  %v38_v27 = vld [vmem:[%s748_s1 + $0xb0] sm:$0xff] }
  0x1f   :  { %143 = vmatpush1.msra.mxu0 %v22_v49  ;;  %210 = vmatpush1.msra.mxu1 %v36_v0  ;;  %v33_v28 = vld [vmem:[%s748_s1 + $0x88] sm:$0xff]  ;;  %v32_v29 = vld [vmem:[%s748_s1 + $0x80] sm:$0xff]  ;;  %v27_v30 = vld [vmem:[%s748_s1 + $0x58] sm:$0xff] }
  0x20   :  { %144 = vmatprep.subr.mxu0 %v17_v51  ;;  %211 = vmatprep.subr.mxu1 %v31_v2  ;;  %v26_v31 = vld [vmem:[%s748_s1 + $0x50] sm:$0xff]  ;;  %v21_v32 = vld [vmem:[%s748_s1 + $0x28] sm:$0xff]  ;;  %v20_v33 = vld [vmem:[%s748_s1 + $0x20] sm:$0xff] }
  0x21   :  { %145 = vmatpush1.msra.mxu0 %v16_v53  ;;  %212 = vmatpush1.msra.mxu1 %v30_v5  ;;  %vm379_vm2 = vmor %vm378_vm1, %vm377_vm0 }
  0x22   :  { %179 = vmatmul.mubr.f32.vlgmr.msra.gmra.mxu0 %v604_v55  ;;  %256 = vmatprep.subr.mxu0 %v111_v56 }
  0x23   :  { %257 = vmatpush1.msra.mxu0 %v110_v57  ;;  %213 = vmatprep.subr.mxu1 %v25_v7 }
  0x24   :  { %258 = vmatprep.subr.mxu0 %v105_v59  ;;  %214 = vmatpush1.msra.mxu1 %v24_v9 }
  0x25   :  { %259 = vmatpush1.msra.mxu0 %v104_v61  ;;  %215 = vmatprep.subr.mxu1 %v19_v11 }
  0x26   :  { %260 = vmatprep.subr.mxu0 %v99_v63  ;;  %216 = vmatpush1.msra.mxu1 %v18_v13 }
  0x27   :  { %261 = vmatpush1.msra.mxu0 %v98_v1  ;;  %250 = vmatmul.mubr.f32.vlgmr.msra.gmra.mxu1 %v604_v55 }
  0x28   :  { %262 = vmatprep.subr.mxu0 %v93_v4  ;;  %320 = vmatprep.mubr.f32.mxu0 %v416_v3  ;;  %v56_v3 = vld [vmem:[%s748_s1 + $0x140] sm:$0xff] }
  0x29   :  { %263 = vmatpush1.msra.mxu0 %v92_v6 }
  0x2a   :  { %264 = vmatprep.subr.mxu0 %v87_v8 }
  0x2b   :  { %265 = vmatpush1.msra.mxu0 %v86_v10 }
  0x2c   :  { %266 = vmatprep.subr.mxu0 %v81_v12 }
  0x2d   :  { %267 = vmatpush1.msra.mxu0 %v80_v14 }
  0x2e   :  { %268 = vmatprep.subr.mxu0 %v75_v15 }
  0x2f   :  { %269 = vmatpush1.msra.mxu0 %v74_v16 }
  0x30   :  { %270 = vmatprep.subr.mxu0 %v69_v17 }
  0x31   :  { %271 = vmatpush1.msra.mxu0 %v68_v18 }
  0x32   :  { %272 = vmatprep.subr.mxu0 %v63_v19 }
  0x33   :  { %273 = vmatpush1.msra.mxu0 %v62_v20 }
  0x34   :  { %274 = vmatprep.subr.mxu0 %v57_v21 }
  0x35   :  { %275 = vmatpush1.msra.mxu0 %v56_v3 }
  0x36   :  { %276 = vmatprep.subr.mxu0 %v51_v22 }
  0x37   :  { %277 = vmatpush1.msra.mxu0 %v50_v23 }
  0x38   :  { %278 = vmatprep.subr.mxu0 %v45_v24 }
  0x39   :  { %279 = vmatpush1.msra.mxu0 %v44_v25 }
  0x3a   :  { %280 = vmatprep.subr.mxu0 %v39_v26 }
  0x3b   :  { %281 = vmatpush1.msra.mxu0 %v38_v27 }
  0x3c   :  { %282 = vmatprep.subr.mxu0 %v33_v28 }
  0x3d   :  { %283 = vmatpush1.msra.mxu0 %v32_v29 }
  0x3e   :  { %284 = vmatprep.subr.mxu0 %v27_v30 }
  0x3f   :  { %285 = vmatpush1.msra.mxu0 %v26_v31 }
  0x40   :  { %286 = vmatprep.subr.mxu0 %v21_v32 }
  0x41   :  { %287 = vmatpush1.msra.mxu0 %v20_v33 }
  0x42   :  { %321 = vmatmul.mubr.f32.vlgmr.msra.gmra.mxu0 %v604_v55 }
  0xe2   :  { %v180_v35 = vpop.f32.mrf.mxu0 }
  0xe3   :  { %v181_v36 = vadd.f32 %v180_v35, %v113_v34 }
  0xe4   :  { %v182_v37 = vpop.f32.mrf.mxu0 }
  0xe5   :  { %v385_v38 = vmul.f32 -1.442695, %v181_v36  ;;  %v183_v39 = vadd.f32 %v182_v37, %v113_v34 }
  0xe7   :  { %392 = vpow2.f32 %v385_v38  ;;  %v386_v40 = vmul.f32 -1.442695, %v183_v39  ;;  %v251_v41 = vpop.f32.mrf.mxu1 }
  0xe8   :  { %v252_v42 = vadd.f32 %v251_v41, %v113_v34 }
  0xe9   :  { %394 = vpow2.f32 %v386_v40  ;;  %v253_v43 = vpop.f32.mrf.mxu1 }
  0xea   :  { %v387_v44 = vmul.f32 -1.442695, %v252_v42  ;;  %v254_v45 = vadd.f32 %v253_v43, %v113_v34 }
  0xec   :  { %396 = vpow2.f32 %v387_v44  ;;  %v388_v46 = vmul.f32 -1.442695, %v254_v45 }
  0xee   :  { %398 = vpow2.f32 %v388_v46 }
  0xf4   :  { %v393_v47 = vpop.eup %392 }
  0xf5   :  { %v345_v48 = vadd.f32 1.0, %v393_v47 }
  0xf6   :  { %v395_v49 = vpop.eup %394 }
  0xf7   :  { %400 = vrcp.f32 %v345_v48  ;;  %v346_v50 = vadd.f32 1.0, %v395_v49 }
  0xf9   :  { %402 = vrcp.f32 %v346_v50  ;;  %v397_v51 = vpop.eup %396 }
  0xfa   :  { %v347_v52 = vadd.f32 1.0, %v397_v51 }
  0xfb   :  { %v399_v53 = vpop.eup %398 }
  0xfc   :  { %404 = vrcp.f32 %v347_v52  ;;  %v348_v54 = vadd.f32 1.0, %v399_v53 }
  0xfe   :  { %406 = vrcp.f32 %v348_v54 }
 0x102   :  { %v322_v55 = vpop.f32.mrf.mxu0 }
 0x103   :  { %v323_v56 = vadd.f32 %v322_v55, %v113_v34 }
 0x104   :  { %v401_v57 = vpop.eup %400  ;;  %v324_v58 = vpop.f32.mrf.mxu0 }
 0x105   :  { %v389_v59 = vmul.f32 -1.442695, %v323_v56  ;;  %v325_v60 = vadd.f32 %v324_v58, %v113_v34 }
 0x106   :  { %v403_v61 = vpop.eup %402 }
 0x107   :  { %v369_v62 = vcombine.low %v401_v57, %v403_v61  ;;  %408 = vpow2.f32 %v389_v59  ;;  %v390_v63 = vmul.f32 -1.442695, %v325_v60 }
 0x109   :  { %375 = vst [vmem:[%s751_s3] sm:$0xff] %v369_v62  ;;  %410 = vpow2.f32 %v390_v63  ;;  %v405_v0 = vpop.eup %404 }
 0x10b   :  { %v407_v1 = vpop.eup %406 }
 0x10c   :  { %v370_v2 = vcombine.low %v405_v0, %v407_v1 }
 0x10e   :  { %376 = vst [vmem:[%s751_s3 + $0x8] sm:$0xff] %v370_v2 }
 0x114   :  { %v409_v4 = vpop.eup %408 }
 0x115   :  { %v349_v5 = vadd.f32 1.0, %v409_v4 }
 0x116   :  { %v411_v6 = vpop.eup %410 }
 0x117   :  { %v350_v7 = vadd.f32 1.0, %v411_v6  ;;  %412 = vrcp.f32 %v349_v5 }
 0x119   :  { %414 = vrcp.f32 %v350_v7 }
 0x124   :  { %v413_v8 = vpop.eup %412 }
 0x126   :  { %v415_v9 = vpop.eup %414 }
 0x127   :  { %v371_v10 = vcombine.low %v413_v8, %v415_v9 }
 0x129   :  { %380 = vst.msk [vmem:[%s751_s3 + $0x10] sm:$0xff] %vm379_vm2, %v371_v10 }

</bundles_post_ra>
